<compile_context>
chip_gen: v7x
topology: tpu7x:2x2x1
jax: 0.10.0
libtpu: 0.0.40
codegen_flags: <defaults>
</compile_context>

<pallas_src>
import jax
import jax.numpy as jnp
from jax.experimental import pallas as pl
from jax.experimental.pallas import tpu as pltpu

LSTM_HIDDEN = 32
LSTM_LAYER = 2
INPUT_SIZE = 5

_G = 4 * LSTM_HIDDEN              # 128 gate lanes per layer

# Packed weight buffer layout (sublane offsets multiples of 8; lane splits at
# the 128-lane group boundary -> all in-kernel slices are tile-friendly).
ROW_WIH0 = 0                      # rows 0:5    lanes 0:128   wih0^T   (I, 4H)
ROW_W0CAT = 8                     # rows 8:40   lanes 0:256   [whh0^T | wih1^T]
ROW_BIAS = 40                     # row  40     lanes 0:128 = b0, 128:256 = b1
ROW_WHH1 = 48                     # rows 48:80  lanes 0:128   whh1^T   (H, 4H)
ROW_FC = 80                       # row 80 lanes 0:H = fc_w; row 81 lane 0 = fc_b
PACK_ROWS = 88
PACK_COLS = 2 * _G                # 256

_VMEM_SPEC = pl.BlockSpec(memory_space=pltpu.MemorySpace.VMEM)


# ------------------------------ fused Pallas kernel -------------------------

def _make_fused_kernel(seq_len, batch):
    T, B = seq_len, batch
    H, G = LSTM_HIDDEN, _G

    def cell(gates, c_prev):
        # Full-width nonlinearities: 2 EUP pushes per cell (not 4).
        sig = jax.nn.sigmoid(gates)                 # i | f | . | o lanes used
        tnh = jnp.tanh(gates)                       # g lanes used
        i_g = sig[:, 0:H]
        f_g = sig[:, H:2 * H]
        o_g = sig[:, 3 * H:4 * H]
        g_g = tnh[:, 2 * H:3 * H]
        c_new = i_g * g_g if c_prev is None else f_g * c_prev + i_g * g_g
        h_new = o_g * jnp.tanh(c_new)
        return h_new, c_new

    def kernel(x_ref, w_ref, out_ref):
        # ---- weight slices: static, sublane/lane-group aligned, loaded once
        wih0 = w_ref[ROW_WIH0:ROW_WIH0 + INPUT_SIZE, 0:G]       # (I, 4H)
        w0cat = w_ref[ROW_W0CAT:ROW_W0CAT + H, :]               # (H, 8H) = [whh0|wih1]
        b0 = w_ref[ROW_BIAS:ROW_BIAS + 1, 0:G]                  # (1, 4H)
        b1 = w_ref[ROW_BIAS:ROW_BIAS + 1, G:2 * G]              # (1, 4H)
        whh1 = w_ref[ROW_WHH1:ROW_WHH1 + H, 0:G]                # (H, 4H)
        fc_w = w_ref[ROW_FC:ROW_FC + 1, 0:H]                    # (1, H)
        fc_b = w_ref[ROW_FC + 1:ROW_FC + 2, 0:1]                # (1, 1)

        x_all = x_ref[...]                                      # (B, T, I)

        h0 = c0 = None
        h1 = c1 = None
        acc = None

        # Static unroll over the T+1 wavefront steps (== fori_loop unroll=True).
        # Step w: layer-0 processes time w, layer-1 processes time w-1 using
        # the h0 produced at step w-1 (read before this step's layer-0 update).
        for w in range(T + 1):
            proj1 = None
            if w < T:
                # ---- layer 0, time t = w (input projection is off the chain)
                gx0 = jnp.dot(x_all[:, w, :], wih0,
                              preferred_element_type=jnp.float32) + b0
                if h0 is None:                                  # h0_{-1} == 0
                    gates0 = gx0
                else:
                    rec = jnp.dot(h0, w0cat,
                                  preferred_element_type=jnp.float32)  # (B, 8H)
                    gates0 = gx0 + rec[:, 0:G]                  # h0 @ whh0
                    proj1 = rec[:, G:2 * G]                     # h0 @ wih1
                h0, c0 = cell(gates0, c0)
            else:
                # last wavefront step: only layer-1's input projection remains
                proj1 = jnp.dot(h0, w0cat,
                                preferred_element_type=jnp.float32)[:, G:2 * G]

            if w >= 1:
                # ---- layer 1, time t = w - 1
                gates1 = proj1 + b1
                if h1 is not None:                              # h1_{-1} == 0
                    gates1 = gates1 + jnp.dot(
                        h1, whh1, preferred_element_type=jnp.float32)
                h1, c1 = cell(gates1, c1)
                acc = h1 if acc is None else acc + h1           # sum over time

        # classifier head: VPU broadcast-mul + lane reduce (no 1-col MXU matmul)
        out_ref[...] = jnp.sum(acc * fc_w, axis=-1, keepdims=True) + fc_b

    return kernel


# --------------------------------- wrapper ----------------------------------

def cpg_predictor_forward(x, params):
    """Equivalent of CpGPredictor.forward (host-side print omitted)."""
    # TODO(synk): the original forward() does print(x.shape); host-side debug
    # side effect, intentionally not reproduced in the kernel.
    x = x.astype(jnp.float32)
    B, T, _ = x.shape
    kernel = _make_fused_kernel(T, B)
    return pl.pallas_call(
        kernel,
        out_shape=jax.ShapeDtypeStruct((B, 1), jnp.float32),
        in_specs=[_VMEM_SPEC, _VMEM_SPEC],
        out_specs=_VMEM_SPEC,
    )(x, params["wpack"])


# --------------------------- parameter construction -------------------------

def init_params(key):
    """Deterministic init mirroring PyTorch's U(-1/sqrt(H), 1/sqrt(H)).

    Builds both the raw per-layer weights (for the pure-JAX reference) and the
    single packed, padded weight buffer consumed by the kernel.
    """
    assert LSTM_LAYER == 2, "fused wavefront kernel is written for 2 layers"
    H = LSTM_HIDDEN
    k = 1.0 / jnp.sqrt(jnp.float32(H))
    params = {"lstm": []}
    for layer in range(LSTM_LAYER):
        in_size = INPUT_SIZE if layer == 0 else H
        key, k1, k2, k3, k4 = jax.random.split(key, 5)
        w_ih = jax.random.uniform(k1, (4 * H, in_size), jnp.float32, -k, k)
        w_hh = jax.random.uniform(k2, (4 * H, H), jnp.float32, -k, k)
        b_ih = jax.random.uniform(k3, (4 * H,), jnp.float32, -k, k)
        b_hh = jax.random.uniform(k4, (4 * H,), jnp.float32, -k, k)
        params["lstm"].append({
            "wih_t": w_ih.T,                          # (I, 4H)
            "whh_t": w_hh.T,                          # (H, 4H)
            "bias": (b_ih + b_hh)[None, :],           # (1, 4H)
        })
    key, k5, k6 = jax.random.split(key, 3)
    fc_w = jax.random.uniform(k5, (1, H), jnp.float32, -k, k)   # (1, H)
    fc_b = jax.random.uniform(k6, (1,), jnp.float32, -k, k)[None, :]  # (1, 1)
    params["fc_w"] = fc_w
    params["fc_b"] = fc_b

    # ---- pack everything once (done at init, not per forward call) ----
    l0, l1 = params["lstm"]
    pack = jnp.zeros((PACK_ROWS, PACK_COLS), jnp.float32)
    pack = pack.at[ROW_WIH0:ROW_WIH0 + INPUT_SIZE, 0:_G].set(l0["wih_t"])
    pack = pack.at[ROW_W0CAT:ROW_W0CAT + H, 0:_G].set(l0["whh_t"])
    pack = pack.at[ROW_W0CAT:ROW_W0CAT + H, _G:2 * _G].set(l1["wih_t"])
    pack = pack.at[ROW_BIAS:ROW_BIAS + 1, 0:_G].set(l0["bias"])
    pack = pack.at[ROW_BIAS:ROW_BIAS + 1, _G:2 * _G].set(l1["bias"])
    pack = pack.at[ROW_WHH1:ROW_WHH1 + H, 0:_G].set(l1["whh_t"])
    pack = pack.at[ROW_FC:ROW_FC + 1, 0:H].set(fc_w)
    pack = pack.at[ROW_FC + 1:ROW_FC + 2, 0:1].set(fc_b)
    params["wpack"] = pack
    return params


# ------------------------------ pure-JAX reference ---------------------------

def ref_forward(x, params):
    h_seq = x.astype(jnp.float32)
    for layer in params["lstm"]:
        B, T, _ = h_seq.shape
        H = layer["whh_t"].shape[0]
        h = jnp.zeros((B, H), jnp.float32)
        c = jnp.zeros((B, H), jnp.float32)
        outs = []
        for t in range(T):
            gates = (h_seq[:, t] @ layer["wih_t"]
                     + h @ layer["whh_t"] + layer["bias"])
            i_g = jax.nn.sigmoid(gates[:, 0:H])
            f_g = jax.nn.sigmoid(gates[:, H:2 * H])
            g_g = jnp.tanh(gates[:, 2 * H:3 * H])
            o_g = jax.nn.sigmoid(gates[:, 3 * H:4 * H])
            c = f_g * c + i_g * g_g
            h = o_g * jnp.tanh(c)
            outs.append(h)
        h_seq = jnp.stack(outs, axis=1)
    final_state = h_seq.sum(axis=1)
    return final_state @ params["fc_w"].T + params["fc_b"]


# ----------------------------------- main ------------------------------------

if __name__ == "__main__":
    key = jax.random.PRNGKey(0)
    k_params, k_x = jax.random.split(key)

    params = init_params(k_params)

    batch, seq = 2, 8
    # one-hot-like DNA encoding over 5 symbols (what the original model consumes)
    idx = jax.random.randint(k_x, (batch, seq), 0, INPUT_SIZE)
    x = jax.nn.one_hot(idx, INPUT_SIZE, dtype=jnp.float32)        # (B, T, 5)

    count = cpg_predictor_forward(x, params)
    jax.block_until_ready(count)

    ref = ref_forward(x, params)
    assert count.shape == (batch, 1)
    assert jnp.allclose(count, ref, atol=1e-4, rtol=1e-4), (count, ref)

    print("KERNEL_OK")
</pallas_src>

<mosaic_0001>
module attributes {stable_mosaic.version = 11 : i64} {
  func.func @kernel(%arg0: memref<2x8x5xf32, #tpu.memory_space<vmem>>, %arg1: memref<88x256xf32, #tpu.memory_space<vmem>>, %arg2: memref<2x1xf32, #tpu.memory_space<vmem>>) attributes {dimension_semantics = [], scalar_prefetch = 0 : i64, scratch_operands = 0 : i64, tpu.core_type = #tpu.core_type<tc>} {
    %c0 = arith.constant 0 : index
    %c0_0 = arith.constant 0 : index
    %0 = vector.load %arg1[%c0, %c0_0] : memref<88x256xf32, #tpu.memory_space<vmem>>, vector<5x128xf32>
    %c8 = arith.constant 8 : index
    %c0_1 = arith.constant 0 : index
    %1 = vector.load %arg1[%c8, %c0_1] : memref<88x256xf32, #tpu.memory_space<vmem>>, vector<32x256xf32>
    %c40 = arith.constant 40 : index
    %c0_2 = arith.constant 0 : index
    %2 = vector.load %arg1[%c40, %c0_2] : memref<88x256xf32, #tpu.memory_space<vmem>>, vector<1x128xf32>
    %c40_3 = arith.constant 40 : index
    %c128 = arith.constant 128 : index
    %3 = vector.load %arg1[%c40_3, %c128] : memref<88x256xf32, #tpu.memory_space<vmem>>, vector<1x128xf32>
    %c48 = arith.constant 48 : index
    %c0_4 = arith.constant 0 : index
    %4 = vector.load %arg1[%c48, %c0_4] : memref<88x256xf32, #tpu.memory_space<vmem>>, vector<32x128xf32>
    %c80 = arith.constant 80 : index
    %c0_5 = arith.constant 0 : index
    %5 = vector.load %arg1[%c80, %c0_5] : memref<88x256xf32, #tpu.memory_space<vmem>>, vector<1x32xf32>
    %c81 = arith.constant 81 : index
    %c0_6 = arith.constant 0 : index
    %6 = vector.load %arg1[%c81, %c0_6] : memref<88x256xf32, #tpu.memory_space<vmem>>, vector<1x1xf32>
    %c0_7 = arith.constant 0 : index
    %c0_8 = arith.constant 0 : index
    %c0_9 = arith.constant 0 : index
    %7 = vector.load %arg0[%c0_7, %c0_8, %c0_9] : memref<2x8x5xf32, #tpu.memory_space<vmem>>, vector<2x8x5xf32>
    %8 = vector.extract_strided_slice %7 {offsets = [0, 0, 0], sizes = [2, 1, 5], strides = [1, 1, 1]} : vector<2x8x5xf32> to vector<2x1x5xf32>
    %9 = vector.shape_cast %8 : vector<2x1x5xf32> to vector<2x5xf32>
    %cst = arith.constant dense<0.000000e+00> : vector<2x128xf32>
    %10 = tpu.matmul %9, %0, %cst {dimension_numbers = #tpu.dot_dimension_numbers<[1], [0], [0], [1], [0, 0, 1, 1], [], []>} : vector<2x5xf32>, vector<5x128xf32>, vector<2x128xf32> -> vector<2x128xf32>
    %11 = vector.broadcast %2 : vector<1x128xf32> to vector<2x128xf32>
    %12 = arith.addf %10, %11 : vector<2x128xf32>
    %13 = arith.negf %12 : vector<2x128xf32>
    %14 = math.exp %13 : vector<2x128xf32>
    %cst_10 = arith.constant 1.000000e+00 : f32
    %15 = vector.broadcast %cst_10 : f32 to vector<2x128xf32>
    %16 = arith.addf %15, %14 : vector<2x128xf32>
    %17 = arith.divf %15, %16 : vector<2x128xf32>
    %18 = math.tanh %12 : vector<2x128xf32>
    %19 = vector.extract_strided_slice %17 {offsets = [0, 0], sizes = [2, 32], strides = [1, 1]} : vector<2x128xf32> to vector<2x32xf32>
    %20 = vector.extract_strided_slice %17 {offsets = [0, 96], sizes = [2, 32], strides = [1, 1]} : vector<2x128xf32> to vector<2x32xf32>
    %21 = vector.extract_strided_slice %18 {offsets = [0, 64], sizes = [2, 32], strides = [1, 1]} : vector<2x128xf32> to vector<2x32xf32>
    %22 = arith.mulf %19, %21 : vector<2x32xf32>
    %23 = math.tanh %22 : vector<2x32xf32>
    %24 = arith.mulf %20, %23 : vector<2x32xf32>
    %25 = vector.extract_strided_slice %7 {offsets = [0, 1, 0], sizes = [2, 1, 5], strides = [1, 1, 1]} : vector<2x8x5xf32> to vector<2x1x5xf32>
    %26 = vector.shape_cast %25 : vector<2x1x5xf32> to vector<2x5xf32>
    %cst_11 = arith.constant dense<0.000000e+00> : vector<2x128xf32>
    %27 = tpu.matmul %26, %0, %cst_11 {dimension_numbers = #tpu.dot_dimension_numbers<[1], [0], [0], [1], [0, 0, 1, 1], [], []>} : vector<2x5xf32>, vector<5x128xf32>, vector<2x128xf32> -> vector<2x128xf32>
    %28 = vector.broadcast %2 : vector<1x128xf32> to vector<2x128xf32>
    %29 = arith.addf %27, %28 : vector<2x128xf32>
    %cst_12 = arith.constant dense<0.000000e+00> : vector<2x256xf32>
    %30 = tpu.matmul %24, %1, %cst_12 {dimension_numbers = #tpu.dot_dimension_numbers<[1], [0], [0], [1], [0, 0, 1, 1], [], []>} : vector<2x32xf32>, vector<32x256xf32>, vector<2x256xf32> -> vector<2x256xf32>
    %31 = vector.extract_strided_slice %30 {offsets = [0, 0], sizes = [2, 128], strides = [1, 1]} : vector<2x256xf32> to vector<2x128xf32>
    %32 = arith.addf %29, %31 : vector<2x128xf32>
    %33 = vector.extract_strided_slice %30 {offsets = [0, 128], sizes = [2, 128], strides = [1, 1]} : vector<2x256xf32> to vector<2x128xf32>
    %34 = arith.negf %32 : vector<2x128xf32>
    %35 = math.exp %34 : vector<2x128xf32>
    %cst_13 = arith.constant 1.000000e+00 : f32
    %36 = vector.broadcast %cst_13 : f32 to vector<2x128xf32>
    %37 = arith.addf %36, %35 : vector<2x128xf32>
    %38 = arith.divf %36, %37 : vector<2x128xf32>
    %39 = math.tanh %32 : vector<2x128xf32>
    %40 = vector.extract_strided_slice %38 {offsets = [0, 0], sizes = [2, 32], strides = [1, 1]} : vector<2x128xf32> to vector<2x32xf32>
    %41 = vector.extract_strided_slice %38 {offsets = [0, 32], sizes = [2, 32], strides = [1, 1]} : vector<2x128xf32> to vector<2x32xf32>
    %42 = vector.extract_strided_slice %38 {offsets = [0, 96], sizes = [2, 32], strides = [1, 1]} : vector<2x128xf32> to vector<2x32xf32>
    %43 = vector.extract_strided_slice %39 {offsets = [0, 64], sizes = [2, 32], strides = [1, 1]} : vector<2x128xf32> to vector<2x32xf32>
    %44 = arith.mulf %41, %22 : vector<2x32xf32>
    %45 = arith.mulf %40, %43 : vector<2x32xf32>
    %46 = arith.addf %44, %45 : vector<2x32xf32>
    %47 = math.tanh %46 : vector<2x32xf32>
    %48 = arith.mulf %42, %47 : vector<2x32xf32>
    %49 = vector.broadcast %3 : vector<1x128xf32> to vector<2x128xf32>
    %50 = arith.addf %33, %49 : vector<2x128xf32>
    %51 = arith.negf %50 : vector<2x128xf32>
    %52 = math.exp %51 : vector<2x128xf32>
    %cst_14 = arith.constant 1.000000e+00 : f32
    %53 = vector.broadcast %cst_14 : f32 to vector<2x128xf32>
    %54 = arith.addf %53, %52 : vector<2x128xf32>
    %55 = arith.divf %53, %54 : vector<2x128xf32>
    %56 = math.tanh %50 : vector<2x128xf32>
    %57 = vector.extract_strided_slice %55 {offsets = [0, 0], sizes = [2, 32], strides = [1, 1]} : vector<2x128xf32> to vector<2x32xf32>
    %58 = vector.extract_strided_slice %55 {offsets = [0, 96], sizes = [2, 32], strides = [1, 1]} : vector<2x128xf32> to vector<2x32xf32>
    %59 = vector.extract_strided_slice %56 {offsets = [0, 64], sizes = [2, 32], strides = [1, 1]} : vector<2x128xf32> to vector<2x32xf32>
    %60 = arith.mulf %57, %59 : vector<2x32xf32>
    %61 = math.tanh %60 : vector<2x32xf32>
    %62 = arith.mulf %58, %61 : vector<2x32xf32>
    %63 = vector.extract_strided_slice %7 {offsets = [0, 2, 0], sizes = [2, 1, 5], strides = [1, 1, 1]} : vector<2x8x5xf32> to vector<2x1x5xf32>
    %64 = vector.shape_cast %63 : vector<2x1x5xf32> to vector<2x5xf32>
    %cst_15 = arith.constant dense<0.000000e+00> : vector<2x128xf32>
    %65 = tpu.matmul %64, %0, %cst_15 {dimension_numbers = #tpu.dot_dimension_numbers<[1], [0], [0], [1], [0, 0, 1, 1], [], []>} : vector<2x5xf32>, vector<5x128xf32>, vector<2x128xf32> -> vector<2x128xf32>
    %66 = vector.broadcast %2 : vector<1x128xf32> to vector<2x128xf32>
    %67 = arith.addf %65, %66 : vector<2x128xf32>
    %cst_16 = arith.constant dense<0.000000e+00> : vector<2x256xf32>
    %68 = tpu.matmul %48, %1, %cst_16 {dimension_numbers = #tpu.dot_dimension_numbers<[1], [0], [0], [1], [0, 0, 1, 1], [], []>} : vector<2x32xf32>, vector<32x256xf32>, vector<2x256xf32> -> vector<2x256xf32>
    %69 = vector.extract_strided_slice %68 {offsets = [0, 0], sizes = [2, 128], strides = [1, 1]} : vector<2x256xf32> to vector<2x128xf32>
    %70 = arith.addf %67, %69 : vector<2x128xf32>
    %71 = vector.extract_strided_slice %68 {offsets = [0, 128], sizes = [2, 128], strides = [1, 1]} : vector<2x256xf32> to vector<2x128xf32>
    %72 = arith.negf %70 : vector<2x128xf32>
    %73 = math.exp %72 : vector<2x128xf32>
    %cst_17 = arith.constant 1.000000e+00 : f32
    %74 = vector.broadcast %cst_17 : f32 to vector<2x128xf32>
    %75 = arith.addf %74, %73 : vector<2x128xf32>
    %76 = arith.divf %74, %75 : vector<2x128xf32>
    %77 = math.tanh %70 : vector<2x128xf32>
    %78 = vector.extract_strided_slice %76 {offsets = [0, 0], sizes = [2, 32], strides = [1, 1]} : vector<2x128xf32> to vector<2x32xf32>
    %79 = vector.extract_strided_slice %76 {offsets = [0, 32], sizes = [2, 32], strides = [1, 1]} : vector<2x128xf32> to vector<2x32xf32>
    %80 = vector.extract_strided_slice %76 {offsets = [0, 96], sizes = [2, 32], strides = [1, 1]} : vector<2x128xf32> to vector<2x32xf32>
    %81 = vector.extract_strided_slice %77 {offsets = [0, 64], sizes = [2, 32], strides = [1, 1]} : vector<2x128xf32> to vector<2x32xf32>
    %82 = arith.mulf %79, %46 : vector<2x32xf32>
    %83 = arith.mulf %78, %81 : vector<2x32xf32>
    %84 = arith.addf %82, %83 : vector<2x32xf32>
    %85 = math.tanh %84 : vector<2x32xf32>
    %86 = arith.mulf %80, %85 : vector<2x32xf32>
    %87 = vector.broadcast %3 : vector<1x128xf32> to vector<2x128xf32>
    %88 = arith.addf %71, %87 : vector<2x128xf32>
    %cst_18 = arith.constant dense<0.000000e+00> : vector<2x128xf32>
    %89 = tpu.matmul %62, %4, %cst_18 {dimension_numbers = #tpu.dot_dimension_numbers<[1], [0], [0], [1], [0, 0, 1, 1], [], []>} : vector<2x32xf32>, vector<32x128xf32>, vector<2x128xf32> -> vector<2x128xf32>
    %90 = arith.addf %88, %89 : vector<2x128xf32>
    %91 = arith.negf %90 : vector<2x128xf32>
    %92 = math.exp %91 : vector<2x128xf32>
    %cst_19 = arith.constant 1.000000e+00 : f32
    %93 = vector.broadcast %cst_19 : f32 to vector<2x128xf32>
    %94 = arith.addf %93, %92 : vector<2x128xf32>
    %95 = arith.divf %93, %94 : vector<2x128xf32>
    %96 = math.tanh %90 : vector<2x128xf32>
    %97 = vector.extract_strided_slice %95 {offsets = [0, 0], sizes = [2, 32], strides = [1, 1]} : vector<2x128xf32> to vector<2x32xf32>
    %98 = vector.extract_strided_slice %95 {offsets = [0, 32], sizes = [2, 32], strides = [1, 1]} : vector<2x128xf32> to vector<2x32xf32>
    %99 = vector.extract_strided_slice %95 {offsets = [0, 96], sizes = [2, 32], strides = [1, 1]} : vector<2x128xf32> to vector<2x32xf32>
    %100 = vector.extract_strided_slice %96 {offsets = [0, 64], sizes = [2, 32], strides = [1, 1]} : vector<2x128xf32> to vector<2x32xf32>
    %101 = arith.mulf %98, %60 : vector<2x32xf32>
    %102 = arith.mulf %97, %100 : vector<2x32xf32>
    %103 = arith.addf %101, %102 : vector<2x32xf32>
    %104 = math.tanh %103 : vector<2x32xf32>
    %105 = arith.mulf %99, %104 : vector<2x32xf32>
    %106 = arith.addf %62, %105 : vector<2x32xf32>
    %107 = vector.extract_strided_slice %7 {offsets = [0, 3, 0], sizes = [2, 1, 5], strides = [1, 1, 1]} : vector<2x8x5xf32> to vector<2x1x5xf32>
    %108 = vector.shape_cast %107 : vector<2x1x5xf32> to vector<2x5xf32>
    %cst_20 = arith.constant dense<0.000000e+00> : vector<2x128xf32>
    %109 = tpu.matmul %108, %0, %cst_20 {dimension_numbers = #tpu.dot_dimension_numbers<[1], [0], [0], [1], [0, 0, 1, 1], [], []>} : vector<2x5xf32>, vector<5x128xf32>, vector<2x128xf32> -> vector<2x128xf32>
    %110 = vector.broadcast %2 : vector<1x128xf32> to vector<2x128xf32>
    %111 = arith.addf %109, %110 : vector<2x128xf32>
    %cst_21 = arith.constant dense<0.000000e+00> : vector<2x256xf32>
    %112 = tpu.matmul %86, %1, %cst_21 {dimension_numbers = #tpu.dot_dimension_numbers<[1], [0], [0], [1], [0, 0, 1, 1], [], []>} : vector<2x32xf32>, vector<32x256xf32>, vector<2x256xf32> -> vector<2x256xf32>
    %113 = vector.extract_strided_slice %112 {offsets = [0, 0], sizes = [2, 128], strides = [1, 1]} : vector<2x256xf32> to vector<2x128xf32>
    %114 = arith.addf %111, %113 : vector<2x128xf32>
    %115 = vector.extract_strided_slice %112 {offsets = [0, 128], sizes = [2, 128], strides = [1, 1]} : vector<2x256xf32> to vector<2x128xf32>
    %116 = arith.negf %114 : vector<2x128xf32>
    %117 = math.exp %116 : vector<2x128xf32>
    %cst_22 = arith.constant 1.000000e+00 : f32
    %118 = vector.broadcast %cst_22 : f32 to vector<2x128xf32>
    %119 = arith.addf %118, %117 : vector<2x128xf32>
    %120 = arith.divf %118, %119 : vector<2x128xf32>
    %121 = math.tanh %114 : vector<2x128xf32>
    %122 = vector.extract_strided_slice %120 {offsets = [0, 0], sizes = [2, 32], strides = [1, 1]} : vector<2x128xf32> to vector<2x32xf32>
    %123 = vector.extract_strided_slice %120 {offsets = [0, 32], sizes = [2, 32], strides = [1, 1]} : vector<2x128xf32> to vector<2x32xf32>
    %124 = vector.extract_strided_slice %120 {offsets = [0, 96], sizes = [2, 32], strides = [1, 1]} : vector<2x128xf32> to vector<2x32xf32>
    %125 = vector.extract_strided_slice %121 {offsets = [0, 64], sizes = [2, 32], strides = [1, 1]} : vector<2x128xf32> to vector<2x32xf32>
    %126 = arith.mulf %123, %84 : vector<2x32xf32>
    %127 = arith.mulf %122, %125 : vector<2x32xf32>
    %128 = arith.addf %126, %127 : vector<2x32xf32>
    %129 = math.tanh %128 : vector<2x32xf32>
    %130 = arith.mulf %124, %129 : vector<2x32xf32>
    %131 = vector.broadcast %3 : vector<1x128xf32> to vector<2x128xf32>
    %132 = arith.addf %115, %131 : vector<2x128xf32>
    %cst_23 = arith.constant dense<0.000000e+00> : vector<2x128xf32>
    %133 = tpu.matmul %105, %4, %cst_23 {dimension_numbers = #tpu.dot_dimension_numbers<[1], [0], [0], [1], [0, 0, 1, 1], [], []>} : vector<2x32xf32>, vector<32x128xf32>, vector<2x128xf32> -> vector<2x128xf32>
    %134 = arith.addf %132, %133 : vector<2x128xf32>
    %135 = arith.negf %134 : vector<2x128xf32>
    %136 = math.exp %135 : vector<2x128xf32>
    %cst_24 = arith.constant 1.000000e+00 : f32
    %137 = vector.broadcast %cst_24 : f32 to vector<2x128xf32>
    %138 = arith.addf %137, %136 : vector<2x128xf32>
    %139 = arith.divf %137, %138 : vector<2x128xf32>
    %140 = math.tanh %134 : vector<2x128xf32>
    %141 = vector.extract_strided_slice %139 {offsets = [0, 0], sizes = [2, 32], strides = [1, 1]} : vector<2x128xf32> to vector<2x32xf32>
    %142 = vector.extract_strided_slice %139 {offsets = [0, 32], sizes = [2, 32], strides = [1, 1]} : vector<2x128xf32> to vector<2x32xf32>
    %143 = vector.extract_strided_slice %139 {offsets = [0, 96], sizes = [2, 32], strides = [1, 1]} : vector<2x128xf32> to vector<2x32xf32>
    %144 = vector.extract_strided_slice %140 {offsets = [0, 64], sizes = [2, 32], strides = [1, 1]} : vector<2x128xf32> to vector<2x32xf32>
    %145 = arith.mulf %142, %103 : vector<2x32xf32>
    %146 = arith.mulf %141, %144 : vector<2x32xf32>
    %147 = arith.addf %145, %146 : vector<2x32xf32>
    %148 = math.tanh %147 : vector<2x32xf32>
    %149 = arith.mulf %143, %148 : vector<2x32xf32>
    %150 = arith.addf %106, %149 : vector<2x32xf32>
    %151 = vector.extract_strided_slice %7 {offsets = [0, 4, 0], sizes = [2, 1, 5], strides = [1, 1, 1]} : vector<2x8x5xf32> to vector<2x1x5xf32>
    %152 = vector.shape_cast %151 : vector<2x1x5xf32> to vector<2x5xf32>
    %cst_25 = arith.constant dense<0.000000e+00> : vector<2x128xf32>
    %153 = tpu.matmul %152, %0, %cst_25 {dimension_numbers = #tpu.dot_dimension_numbers<[1], [0], [0], [1], [0, 0, 1, 1], [], []>} : vector<2x5xf32>, vector<5x128xf32>, vector<2x128xf32> -> vector<2x128xf32>
    %154 = vector.broadcast %2 : vector<1x128xf32> to vector<2x128xf32>
    %155 = arith.addf %153, %154 : vector<2x128xf32>
    %cst_26 = arith.constant dense<0.000000e+00> : vector<2x256xf32>
    %156 = tpu.matmul %130, %1, %cst_26 {dimension_numbers = #tpu.dot_dimension_numbers<[1], [0], [0], [1], [0, 0, 1, 1], [], []>} : vector<2x32xf32>, vector<32x256xf32>, vector<2x256xf32> -> vector<2x256xf32>
    %157 = vector.extract_strided_slice %156 {offsets = [0, 0], sizes = [2, 128], strides = [1, 1]} : vector<2x256xf32> to vector<2x128xf32>
    %158 = arith.addf %155, %157 : vector<2x128xf32>
    %159 = vector.extract_strided_slice %156 {offsets = [0, 128], sizes = [2, 128], strides = [1, 1]} : vector<2x256xf32> to vector<2x128xf32>
    %160 = arith.negf %158 : vector<2x128xf32>
    %161 = math.exp %160 : vector<2x128xf32>
    %cst_27 = arith.constant 1.000000e+00 : f32
    %162 = vector.broadcast %cst_27 : f32 to vector<2x128xf32>
    %163 = arith.addf %162, %161 : vector<2x128xf32>
    %164 = arith.divf %162, %163 : vector<2x128xf32>
    %165 = math.tanh %158 : vector<2x128xf32>
    %166 = vector.extract_strided_slice %164 {offsets = [0, 0], sizes = [2, 32], strides = [1, 1]} : vector<2x128xf32> to vector<2x32xf32>
    %167 = vector.extract_strided_slice %164 {offsets = [0, 32], sizes = [2, 32], strides = [1, 1]} : vector<2x128xf32> to vector<2x32xf32>
    %168 = vector.extract_strided_slice %164 {offsets = [0, 96], sizes = [2, 32], strides = [1, 1]} : vector<2x128xf32> to vector<2x32xf32>
    %169 = vector.extract_strided_slice %165 {offsets = [0, 64], sizes = [2, 32], strides = [1, 1]} : vector<2x128xf32> to vector<2x32xf32>
    %170 = arith.mulf %167, %128 : vector<2x32xf32>
    %171 = arith.mulf %166, %169 : vector<2x32xf32>
    %172 = arith.addf %170, %171 : vector<2x32xf32>
    %173 = math.tanh %172 : vector<2x32xf32>
    %174 = arith.mulf %168, %173 : vector<2x32xf32>
    %175 = vector.broadcast %3 : vector<1x128xf32> to vector<2x128xf32>
    %176 = arith.addf %159, %175 : vector<2x128xf32>
    %cst_28 = arith.constant dense<0.000000e+00> : vector<2x128xf32>
    %177 = tpu.matmul %149, %4, %cst_28 {dimension_numbers = #tpu.dot_dimension_numbers<[1], [0], [0], [1], [0, 0, 1, 1], [], []>} : vector<2x32xf32>, vector<32x128xf32>, vector<2x128xf32> -> vector<2x128xf32>
    %178 = arith.addf %176, %177 : vector<2x128xf32>
    %179 = arith.negf %178 : vector<2x128xf32>
    %180 = math.exp %179 : vector<2x128xf32>
    %cst_29 = arith.constant 1.000000e+00 : f32
    %181 = vector.broadcast %cst_29 : f32 to vector<2x128xf32>
    %182 = arith.addf %181, %180 : vector<2x128xf32>
    %183 = arith.divf %181, %182 : vector<2x128xf32>
    %184 = math.tanh %178 : vector<2x128xf32>
    %185 = vector.extract_strided_slice %183 {offsets = [0, 0], sizes = [2, 32], strides = [1, 1]} : vector<2x128xf32> to vector<2x32xf32>
    %186 = vector.extract_strided_slice %183 {offsets = [0, 32], sizes = [2, 32], strides = [1, 1]} : vector<2x128xf32> to vector<2x32xf32>
    %187 = vector.extract_strided_slice %183 {offsets = [0, 96], sizes = [2, 32], strides = [1, 1]} : vector<2x128xf32> to vector<2x32xf32>
    %188 = vector.extract_strided_slice %184 {offsets = [0, 64], sizes = [2, 32], strides = [1, 1]} : vector<2x128xf32> to vector<2x32xf32>
    %189 = arith.mulf %186, %147 : vector<2x32xf32>
    %190 = arith.mulf %185, %188 : vector<2x32xf32>
    %191 = arith.addf %189, %190 : vector<2x32xf32>
    %192 = math.tanh %191 : vector<2x32xf32>
    %193 = arith.mulf %187, %192 : vector<2x32xf32>
    %194 = arith.addf %150, %193 : vector<2x32xf32>
    %195 = vector.extract_strided_slice %7 {offsets = [0, 5, 0], sizes = [2, 1, 5], strides = [1, 1, 1]} : vector<2x8x5xf32> to vector<2x1x5xf32>
    %196 = vector.shape_cast %195 : vector<2x1x5xf32> to vector<2x5xf32>
    %cst_30 = arith.constant dense<0.000000e+00> : vector<2x128xf32>
    %197 = tpu.matmul %196, %0, %cst_30 {dimension_numbers = #tpu.dot_dimension_numbers<[1], [0], [0], [1], [0, 0, 1, 1], [], []>} : vector<2x5xf32>, vector<5x128xf32>, vector<2x128xf32> -> vector<2x128xf32>
    %198 = vector.broadcast %2 : vector<1x128xf32> to vector<2x128xf32>
    %199 = arith.addf %197, %198 : vector<2x128xf32>
    %cst_31 = arith.constant dense<0.000000e+00> : vector<2x256xf32>
    %200 = tpu.matmul %174, %1, %cst_31 {dimension_numbers = #tpu.dot_dimension_numbers<[1], [0], [0], [1], [0, 0, 1, 1], [], []>} : vector<2x32xf32>, vector<32x256xf32>, vector<2x256xf32> -> vector<2x256xf32>
    %201 = vector.extract_strided_slice %200 {offsets = [0, 0], sizes = [2, 128], strides = [1, 1]} : vector<2x256xf32> to vector<2x128xf32>
    %202 = arith.addf %199, %201 : vector<2x128xf32>
    %203 = vector.extract_strided_slice %200 {offsets = [0, 128], sizes = [2, 128], strides = [1, 1]} : vector<2x256xf32> to vector<2x128xf32>
    %204 = arith.negf %202 : vector<2x128xf32>
    %205 = math.exp %204 : vector<2x128xf32>
    %cst_32 = arith.constant 1.000000e+00 : f32
    %206 = vector.broadcast %cst_32 : f32 to vector<2x128xf32>
    %207 = arith.addf %206, %205 : vector<2x128xf32>
    %208 = arith.divf %206, %207 : vector<2x128xf32>
    %209 = math.tanh %202 : vector<2x128xf32>
    %210 = vector.extract_strided_slice %208 {offsets = [0, 0], sizes = [2, 32], strides = [1, 1]} : vector<2x128xf32> to vector<2x32xf32>
    %211 = vector.extract_strided_slice %208 {offsets = [0, 32], sizes = [2, 32], strides = [1, 1]} : vector<2x128xf32> to vector<2x32xf32>
    %212 = vector.extract_strided_slice %208 {offsets = [0, 96], sizes = [2, 32], strides = [1, 1]} : vector<2x128xf32> to vector<2x32xf32>
    %213 = vector.extract_strided_slice %209 {offsets = [0, 64], sizes = [2, 32], strides = [1, 1]} : vector<2x128xf32> to vector<2x32xf32>
    %214 = arith.mulf %211, %172 : vector<2x32xf32>
    %215 = arith.mulf %210, %213 : vector<2x32xf32>
    %216 = arith.addf %214, %215 : vector<2x32xf32>
    %217 = math.tanh %216 : vector<2x32xf32>
    %218 = arith.mulf %212, %217 : vector<2x32xf32>
    %219 = vector.broadcast %3 : vector<1x128xf32> to vector<2x128xf32>
    %220 = arith.addf %203, %219 : vector<2x128xf32>
    %cst_33 = arith.constant dense<0.000000e+00> : vector<2x128xf32>
    %221 = tpu.matmul %193, %4, %cst_33 {dimension_numbers = #tpu.dot_dimension_numbers<[1], [0], [0], [1], [0, 0, 1, 1], [], []>} : vector<2x32xf32>, vector<32x128xf32>, vector<2x128xf32> -> vector<2x128xf32>
    %222 = arith.addf %220, %221 : vector<2x128xf32>
    %223 = arith.negf %222 : vector<2x128xf32>
    %224 = math.exp %223 : vector<2x128xf32>
    %cst_34 = arith.constant 1.000000e+00 : f32
    %225 = vector.broadcast %cst_34 : f32 to vector<2x128xf32>
    %226 = arith.addf %225, %224 : vector<2x128xf32>
    %227 = arith.divf %225, %226 : vector<2x128xf32>
    %228 = math.tanh %222 : vector<2x128xf32>
    %229 = vector.extract_strided_slice %227 {offsets = [0, 0], sizes = [2, 32], strides = [1, 1]} : vector<2x128xf32> to vector<2x32xf32>
    %230 = vector.extract_strided_slice %227 {offsets = [0, 32], sizes = [2, 32], strides = [1, 1]} : vector<2x128xf32> to vector<2x32xf32>
    %231 = vector.extract_strided_slice %227 {offsets = [0, 96], sizes = [2, 32], strides = [1, 1]} : vector<2x128xf32> to vector<2x32xf32>
    %232 = vector.extract_strided_slice %228 {offsets = [0, 64], sizes = [2, 32], strides = [1, 1]} : vector<2x128xf32> to vector<2x32xf32>
    %233 = arith.mulf %230, %191 : vector<2x32xf32>
    %234 = arith.mulf %229, %232 : vector<2x32xf32>
    %235 = arith.addf %233, %234 : vector<2x32xf32>
    %236 = math.tanh %235 : vector<2x32xf32>
    %237 = arith.mulf %231, %236 : vector<2x32xf32>
    %238 = arith.addf %194, %237 : vector<2x32xf32>
    %239 = vector.extract_strided_slice %7 {offsets = [0, 6, 0], sizes = [2, 1, 5], strides = [1, 1, 1]} : vector<2x8x5xf32> to vector<2x1x5xf32>
    %240 = vector.shape_cast %239 : vector<2x1x5xf32> to vector<2x5xf32>
    %cst_35 = arith.constant dense<0.000000e+00> : vector<2x128xf32>
    %241 = tpu.matmul %240, %0, %cst_35 {dimension_numbers = #tpu.dot_dimension_numbers<[1], [0], [0], [1], [0, 0, 1, 1], [], []>} : vector<2x5xf32>, vector<5x128xf32>, vector<2x128xf32> -> vector<2x128xf32>
    %242 = vector.broadcast %2 : vector<1x128xf32> to vector<2x128xf32>
    %243 = arith.addf %241, %242 : vector<2x128xf32>
    %cst_36 = arith.constant dense<0.000000e+00> : vector<2x256xf32>
    %244 = tpu.matmul %218, %1, %cst_36 {dimension_numbers = #tpu.dot_dimension_numbers<[1], [0], [0], [1], [0, 0, 1, 1], [], []>} : vector<2x32xf32>, vector<32x256xf32>, vector<2x256xf32> -> vector<2x256xf32>
    %245 = vector.extract_strided_slice %244 {offsets = [0, 0], sizes = [2, 128], strides = [1, 1]} : vector<2x256xf32> to vector<2x128xf32>
    %246 = arith.addf %243, %245 : vector<2x128xf32>
    %247 = vector.extract_strided_slice %244 {offsets = [0, 128], sizes = [2, 128], strides = [1, 1]} : vector<2x256xf32> to vector<2x128xf32>
    %248 = arith.negf %246 : vector<2x128xf32>
    %249 = math.exp %248 : vector<2x128xf32>
    %cst_37 = arith.constant 1.000000e+00 : f32
    %250 = vector.broadcast %cst_37 : f32 to vector<2x128xf32>
    %251 = arith.addf %250, %249 : vector<2x128xf32>
    %252 = arith.divf %250, %251 : vector<2x128xf32>
    %253 = math.tanh %246 : vector<2x128xf32>
    %254 = vector.extract_strided_slice %252 {offsets = [0, 0], sizes = [2, 32], strides = [1, 1]} : vector<2x128xf32> to vector<2x32xf32>
    %255 = vector.extract_strided_slice %252 {offsets = [0, 32], sizes = [2, 32], strides = [1, 1]} : vector<2x128xf32> to vector<2x32xf32>
    %256 = vector.extract_strided_slice %252 {offsets = [0, 96], sizes = [2, 32], strides = [1, 1]} : vector<2x128xf32> to vector<2x32xf32>
    %257 = vector.extract_strided_slice %253 {offsets = [0, 64], sizes = [2, 32], strides = [1, 1]} : vector<2x128xf32> to vector<2x32xf32>
    %258 = arith.mulf %255, %216 : vector<2x32xf32>
    %259 = arith.mulf %254, %257 : vector<2x32xf32>
    %260 = arith.addf %258, %259 : vector<2x32xf32>
    %261 = math.tanh %260 : vector<2x32xf32>
    %262 = arith.mulf %256, %261 : vector<2x32xf32>
    %263 = vector.broadcast %3 : vector<1x128xf32> to vector<2x128xf32>
    %264 = arith.addf %247, %263 : vector<2x128xf32>
    %cst_38 = arith.constant dense<0.000000e+00> : vector<2x128xf32>
    %265 = tpu.matmul %237, %4, %cst_38 {dimension_numbers = #tpu.dot_dimension_numbers<[1], [0], [0], [1], [0, 0, 1, 1], [], []>} : vector<2x32xf32>, vector<32x128xf32>, vector<2x128xf32> -> vector<2x128xf32>
    %266 = arith.addf %264, %265 : vector<2x128xf32>
    %267 = arith.negf %266 : vector<2x128xf32>
    %268 = math.exp %267 : vector<2x128xf32>
    %cst_39 = arith.constant 1.000000e+00 : f32
    %269 = vector.broadcast %cst_39 : f32 to vector<2x128xf32>
    %270 = arith.addf %269, %268 : vector<2x128xf32>
    %271 = arith.divf %269, %270 : vector<2x128xf32>
    %272 = math.tanh %266 : vector<2x128xf32>
    %273 = vector.extract_strided_slice %271 {offsets = [0, 0], sizes = [2, 32], strides = [1, 1]} : vector<2x128xf32> to vector<2x32xf32>
    %274 = vector.extract_strided_slice %271 {offsets = [0, 32], sizes = [2, 32], strides = [1, 1]} : vector<2x128xf32> to vector<2x32xf32>
    %275 = vector.extract_strided_slice %271 {offsets = [0, 96], sizes = [2, 32], strides = [1, 1]} : vector<2x128xf32> to vector<2x32xf32>
    %276 = vector.extract_strided_slice %272 {offsets = [0, 64], sizes = [2, 32], strides = [1, 1]} : vector<2x128xf32> to vector<2x32xf32>
    %277 = arith.mulf %274, %235 : vector<2x32xf32>
    %278 = arith.mulf %273, %276 : vector<2x32xf32>
    %279 = arith.addf %277, %278 : vector<2x32xf32>
    %280 = math.tanh %279 : vector<2x32xf32>
    %281 = arith.mulf %275, %280 : vector<2x32xf32>
    %282 = arith.addf %238, %281 : vector<2x32xf32>
    %283 = vector.extract_strided_slice %7 {offsets = [0, 7, 0], sizes = [2, 1, 5], strides = [1, 1, 1]} : vector<2x8x5xf32> to vector<2x1x5xf32>
    %284 = vector.shape_cast %283 : vector<2x1x5xf32> to vector<2x5xf32>
    %cst_40 = arith.constant dense<0.000000e+00> : vector<2x128xf32>
    %285 = tpu.matmul %284, %0, %cst_40 {dimension_numbers = #tpu.dot_dimension_numbers<[1], [0], [0], [1], [0, 0, 1, 1], [], []>} : vector<2x5xf32>, vector<5x128xf32>, vector<2x128xf32> -> vector<2x128xf32>
    %286 = vector.broadcast %2 : vector<1x128xf32> to vector<2x128xf32>
    %287 = arith.addf %285, %286 : vector<2x128xf32>
    %cst_41 = arith.constant dense<0.000000e+00> : vector<2x256xf32>
    %288 = tpu.matmul %262, %1, %cst_41 {dimension_numbers = #tpu.dot_dimension_numbers<[1], [0], [0], [1], [0, 0, 1, 1], [], []>} : vector<2x32xf32>, vector<32x256xf32>, vector<2x256xf32> -> vector<2x256xf32>
    %289 = vector.extract_strided_slice %288 {offsets = [0, 0], sizes = [2, 128], strides = [1, 1]} : vector<2x256xf32> to vector<2x128xf32>
    %290 = arith.addf %287, %289 : vector<2x128xf32>
    %291 = vector.extract_strided_slice %288 {offsets = [0, 128], sizes = [2, 128], strides = [1, 1]} : vector<2x256xf32> to vector<2x128xf32>
    %292 = arith.negf %290 : vector<2x128xf32>
    %293 = math.exp %292 : vector<2x128xf32>
    %cst_42 = arith.constant 1.000000e+00 : f32
    %294 = vector.broadcast %cst_42 : f32 to vector<2x128xf32>
    %295 = arith.addf %294, %293 : vector<2x128xf32>
    %296 = arith.divf %294, %295 : vector<2x128xf32>
    %297 = math.tanh %290 : vector<2x128xf32>
    %298 = vector.extract_strided_slice %296 {offsets = [0, 0], sizes = [2, 32], strides = [1, 1]} : vector<2x128xf32> to vector<2x32xf32>
    %299 = vector.extract_strided_slice %296 {offsets = [0, 32], sizes = [2, 32], strides = [1, 1]} : vector<2x128xf32> to vector<2x32xf32>
    %300 = vector.extract_strided_slice %296 {offsets = [0, 96], sizes = [2, 32], strides = [1, 1]} : vector<2x128xf32> to vector<2x32xf32>
    %301 = vector.extract_strided_slice %297 {offsets = [0, 64], sizes = [2, 32], strides = [1, 1]} : vector<2x128xf32> to vector<2x32xf32>
    %302 = arith.mulf %299, %260 : vector<2x32xf32>
    %303 = arith.mulf %298, %301 : vector<2x32xf32>
    %304 = arith.addf %302, %303 : vector<2x32xf32>
    %305 = math.tanh %304 : vector<2x32xf32>
    %306 = arith.mulf %300, %305 : vector<2x32xf32>
    %307 = vector.broadcast %3 : vector<1x128xf32> to vector<2x128xf32>
    %308 = arith.addf %291, %307 : vector<2x128xf32>
    %cst_43 = arith.constant dense<0.000000e+00> : vector<2x128xf32>
    %309 = tpu.matmul %281, %4, %cst_43 {dimension_numbers = #tpu.dot_dimension_numbers<[1], [0], [0], [1], [0, 0, 1, 1], [], []>} : vector<2x32xf32>, vector<32x128xf32>, vector<2x128xf32> -> vector<2x128xf32>
    %310 = arith.addf %308, %309 : vector<2x128xf32>
    %311 = arith.negf %310 : vector<2x128xf32>
    %312 = math.exp %311 : vector<2x128xf32>
    %cst_44 = arith.constant 1.000000e+00 : f32
    %313 = vector.broadcast %cst_44 : f32 to vector<2x128xf32>
    %314 = arith.addf %313, %312 : vector<2x128xf32>
    %315 = arith.divf %313, %314 : vector<2x128xf32>
    %316 = math.tanh %310 : vector<2x128xf32>
    %317 = vector.extract_strided_slice %315 {offsets = [0, 0], sizes = [2, 32], strides = [1, 1]} : vector<2x128xf32> to vector<2x32xf32>
    %318 = vector.extract_strided_slice %315 {offsets = [0, 32], sizes = [2, 32], strides = [1, 1]} : vector<2x128xf32> to vector<2x32xf32>
    %319 = vector.extract_strided_slice %315 {offsets = [0, 96], sizes = [2, 32], strides = [1, 1]} : vector<2x128xf32> to vector<2x32xf32>
    %320 = vector.extract_strided_slice %316 {offsets = [0, 64], sizes = [2, 32], strides = [1, 1]} : vector<2x128xf32> to vector<2x32xf32>
    %321 = arith.mulf %318, %279 : vector<2x32xf32>
    %322 = arith.mulf %317, %320 : vector<2x32xf32>
    %323 = arith.addf %321, %322 : vector<2x32xf32>
    %324 = math.tanh %323 : vector<2x32xf32>
    %325 = arith.mulf %319, %324 : vector<2x32xf32>
    %326 = arith.addf %282, %325 : vector<2x32xf32>
    %cst_45 = arith.constant dense<0.000000e+00> : vector<2x256xf32>
    %327 = tpu.matmul %306, %1, %cst_45 {dimension_numbers = #tpu.dot_dimension_numbers<[1], [0], [0], [1], [0, 0, 1, 1], [], []>} : vector<2x32xf32>, vector<32x256xf32>, vector<2x256xf32> -> vector<2x256xf32>
    %328 = vector.extract_strided_slice %327 {offsets = [0, 128], sizes = [2, 128], strides = [1, 1]} : vector<2x256xf32> to vector<2x128xf32>
    %329 = vector.broadcast %3 : vector<1x128xf32> to vector<2x128xf32>
    %330 = arith.addf %328, %329 : vector<2x128xf32>
    %cst_46 = arith.constant dense<0.000000e+00> : vector<2x128xf32>
    %331 = tpu.matmul %325, %4, %cst_46 {dimension_numbers = #tpu.dot_dimension_numbers<[1], [0], [0], [1], [0, 0, 1, 1], [], []>} : vector<2x32xf32>, vector<32x128xf32>, vector<2x128xf32> -> vector<2x128xf32>
    %332 = arith.addf %330, %331 : vector<2x128xf32>
    %333 = arith.negf %332 : vector<2x128xf32>
    %334 = math.exp %333 : vector<2x128xf32>
    %cst_47 = arith.constant 1.000000e+00 : f32
    %335 = vector.broadcast %cst_47 : f32 to vector<2x128xf32>
    %336 = arith.addf %335, %334 : vector<2x128xf32>
    %337 = arith.divf %335, %336 : vector<2x128xf32>
    %338 = math.tanh %332 : vector<2x128xf32>
    %339 = vector.extract_strided_slice %337 {offsets = [0, 0], sizes = [2, 32], strides = [1, 1]} : vector<2x128xf32> to vector<2x32xf32>
    %340 = vector.extract_strided_slice %337 {offsets = [0, 32], sizes = [2, 32], strides = [1, 1]} : vector<2x128xf32> to vector<2x32xf32>
    %341 = vector.extract_strided_slice %337 {offsets = [0, 96], sizes = [2, 32], strides = [1, 1]} : vector<2x128xf32> to vector<2x32xf32>
    %342 = vector.extract_strided_slice %338 {offsets = [0, 64], sizes = [2, 32], strides = [1, 1]} : vector<2x128xf32> to vector<2x32xf32>
    %343 = arith.mulf %340, %323 : vector<2x32xf32>
    %344 = arith.mulf %339, %342 : vector<2x32xf32>
    %345 = arith.addf %343, %344 : vector<2x32xf32>
    %346 = math.tanh %345 : vector<2x32xf32>
    %347 = arith.mulf %341, %346 : vector<2x32xf32>
    %348 = arith.addf %326, %347 : vector<2x32xf32>
    %349 = vector.broadcast %5 : vector<1x32xf32> to vector<2x32xf32>
    %350 = arith.mulf %348, %349 : vector<2x32xf32>
    %cst_48 = arith.constant dense<0.000000e+00> : vector<2xf32>
    %351 = vector.multi_reduction <add>, %350, %cst_48 [1] : vector<2x32xf32> to vector<2xf32>
    %352 = vector.shape_cast %351 : vector<2xf32> to vector<2x1xf32>
    %353 = vector.broadcast %6 : vector<1x1xf32> to vector<2x1xf32>
    %354 = arith.addf %352, %353 : vector<2x1xf32>
    %c0_49 = arith.constant 0 : index
    %c0_50 = arith.constant 0 : index
    %355 = vector.load %arg2[%c0_49, %c0_50] : memref<2x1xf32, #tpu.memory_space<vmem>>, vector<2x1xf32>
    tpu.vector_store %arg2[%c0_49, %c0_50], %354 {strides = array<i32>} : memref<2x1xf32, #tpu.memory_space<vmem>>, vector<2x1xf32>,
    return
  }
}

</mosaic_0001>

<bundles_post_ra>
// kernel: tpu_custom_call.1
= control target key start
LH: loop header
LB: loop body
LE: loop exit
PB: predicated region body
PF: predicated region fallthrough
CT: control target
= control target key end

     0   :  { %7 = vsyncpa [#allocation3], 0  ;;  %s2695_s9 = smov [#allocation2]   ;;  %s3080_s0 = inlined_call_operand.vmem [shape: f32[2,8,5], index: 0, kind: input, shape index: {}]   ;;  %s3081_s1 = inlined_call_operand.hbm [shape: f32[88,256], index: 1, kind: input, shape index: {}]   ;;  %s3082_s2 = inlined_call_operand.vmem [shape: f32[2,1], index: 2, kind: output, shape index: {}]  }
   0x1   :  { %s15_s10 = sshll.u32 %s2695_s9, 4  ;;  %s2671_s13 = scalar_lea.hbm %s3081_s1, 2816  ;;  %s16_s10 = int_to_ptr.vmem [resolvable:$true] %s15_s10 }
   0x2   :  { %p2672_p0 = scmp.ne.s32.totalorder %s3081_s1, %s2671_s13  ;;  %p2675_p1 = scmp.lt.u32.totalorder %s2671_s13, %s3081_s1 }
   0x4   :  { %p2677_p2 = pnand %p2675_p1, %p2672_p0 }
   0x6   :  { %2680 = shalt.err (!%p2677_p2)
}
   0x7   :  { %s2681_s18 = scalar_lea.vmem %s16_s10, 2816  ;;  %p2686_p4 = scmp.lt.s32.totalorder %s16_s10, %s16_s10 }
   0x8   :  { %p2682_p3 = scmp.ne.s32.totalorder %s16_s10, %s2681_s18  ;;  %p2687_p5 = scmp.lt.s32.totalorder %s2681_s18, %s2681_s18 }
   0xa   :  { %p2688_p6 = por %p2687_p5, %p2686_p4 }
   0xc   :  { %p2689_p7 = pnand %p2688_p6, %p2682_p3 }
   0xe   :  { %2692 = shalt.err (!%p2689_p7)
}
   0xf   :  { %s2696_s19 = smov 256   ;;  %s2697_s20 = smov 16  }
  0x10   :  { %21 = dma.hbm_to_vmem [thread:$0]  %s3081_s1, 2816, %s16_s10, [#allocation3], %s2696_s19, %s2696_s19, %s2697_s20  }
  0x11   :  { %2693 = dma.done.wait [#allocation3], 2816  }
  0x12   :  { %2694 = vsyncadd [#allocation3], 4294964480  ;;  %v2698_v0 = vmov 0.0   ;;  %vm2699_vm0 = vmmov 0   ;;  %vm52_vm1 = vcmask 1044480   ;;  %v2742_v2 = vld [vmem:[%s3080_s0] sm:$0xff] }
  0x13   :  { %2311 = vmatprep.subr.mxu0 %v2698_v0  ;;  %2313 = vmatprep.mubr.msk.f32.mxu0 %vm2699_vm0, %v2698_v0  ;;  %v2737_v1 = vld [vmem:[#allocation2] sm:$0x1f]  ;;  %v2747_v3 = vld [vmem:[%s3080_s0 + $0x8] sm:$0xff]  ;;  %vm47_vm2 = vcmask 1041409   ;;  %vm49_vm3 = vcmask 39936   ;;  %s2700_s0 = smov 64  }
  0x14   :  { %2316 = vmatprep.subr.mxu1 %v2698_v0  ;;  %2318 = vmatprep.mubr.msk.f32.mxu1 %vm2699_vm0, %v2698_v0  ;;  %v46_v4 = vrot.slane %v2747_v3, 7  ;;  %v2759_v6 = vld [vmem:[#allocation2 + $0x50] ss:$0 sm:$0xff]  ;;  %v27_v17 = vld [vmem:[#allocation2 + $0x18] sm:$0xff]  ;;  %v29_v18 = vld [vmem:[#allocation2 + $0x28] sm:$0xff]  ;;  %v144_v20 = vrot.slane %v2742_v2, 1 }
  0x15   :  { %2312 = vmatpush3.msk.msra.mxu0 %vm52_vm1, %v2737_v1  ;;  %2317 = vmatpush3.msk.msra.mxu1 %vm52_vm1, %v2737_v1  ;;  %v26_v19 = vld [vmem:[#allocation2 + $0x10] sm:$0xff]  ;;  %v2764_v21 = vpack.c.bf16 %v29_v18, %v27_v17  ;;  %v28_v22 = vld [vmem:[#allocation2 + $0x20] sm:$0xff]  ;;  %v31_v23 = vld [vmem:[#allocation2 + $0x38] sm:$0xff]  ;;  %s2701_s26 = smov 96   ;;  %s2702_s27 = smov 32   ;;  %vm221_vm4 = vcmask 261120  }
  0x16   :  { %2321 = vmatprep.subr.mxu1 %v2698_v0  ;;  %v48_v5 = vsel %vm47_vm2, %v46_v4, %v2742_v2  ;;  %v33_v24 = vld [vmem:[#allocation2 + $0x48] sm:$0xff]  ;;  %v2766_v25 = vpack.c.bf16 %v28_v22, %v26_v19  ;;  %v145_v27 = vsel %vm47_vm2, %v2747_v3, %v144_v20  ;;  %v30_v28 = vld [vmem:[#allocation2 + $0x30] sm:$0xff]  ;;  %v32_v29 = vld [vmem:[#allocation2 + $0x40] sm:$0xff]  ;;  %v2703_v61 = vmov 0.0|0.0  }
  0x17   :  { %2314 = vmatmul.mubr.msk.f32.vlgmr.msra.gmra.mrb[0].mxu0 %vm49_vm3, %v48_v5  ;;  %v2768_v26 = vpack.c.bf16 %v33_v24, %v31_v23  ;;  %2429 = vmatprep.subr.bf16.mxu0 %v2764_v21  ;;  %v2775_v30 = vpack.c.bf16 %v32_v29, %v30_v28  ;;  %v2791_v38 = vld [vmem:[#allocation2 + $0x58] ss:$0 sm:$0xff]  ;;  %v36_v58 = vld [vmem:[#allocation2 + $0x60] sm:$0xff]  ;;  %v37_v59 = vld [vmem:[#allocation2 + $0x70] sm:$0xff]  ;;  %vm2201_vm5 = vcmask 254976   ;;  %vm2206_vm6 = vcmask 1024  }
  0x18   :  { %288 = vmatprep.mubr.f32.mxu0 %v2698_v0  ;;  %2319 = vmatmul.mubr.msk.f32.vlgmr.msra.gmra.mrb[0].mxu1 %vm49_vm3, %v145_v27  ;;  %v38_v60 = vld [vmem:[#allocation2 + $0x80] sm:$0xff]  ;;  %v2801_v62 = vpack.c.bf16 %v37_v59, %v36_v58  ;;  %v39_v63 = vld [vmem:[#allocation2 + $0x90] sm:$0xff] }
  0x19   :  { %2431 = vmatpush1.bf16.msra.mxu0 %v2766_v25  ;;  %2322 = vmatpush3.msk.msra.mxu1 %vm52_vm1, %v2737_v1  ;;  %v2804_v4 = vpack.c.bf16 %v39_v63, %v38_v60 }
  0x1a   :  { %2433 = vmatprep.subr.bf16.mxu0 %v2768_v26  ;;  %2323 = vmatprep.mubr.msk.f32.mxu1 %vm2699_vm0, %v2698_v0 }
  0x1b   :  { %2437 = vmatprep.subr.bf16.mxu1 %v2764_v21 }
  0x1d   :  { %2435 = vmatpush1.bf16.msra.mxu0 %v2775_v30 }
  0x1e   :  { %2444 = vmatprep.subr.bf16.mxu0 %v2703_v61 }
  0xea   :  { %v122_v7 = vpop.f32.mrb[0].mxu0 }
  0xeb   :  { %v123_v8 = vadd.f32 %v122_v7, %v2759_v6  ;;  %v2315_v9 = vpop.f32.mrb[1].mxu0  ;;  %v214_v34 = vpop.f32.mrb[0].mxu1 }
  0xec   :  { %v2320_v35 = vpop.f32.mrb[1].mxu1  ;;  %v215_v37 = vadd.f32 %v214_v34, %v2759_v6 }
  0xed   :  { %2543 = vtanh.f32 %v123_v8  ;;  %v2215_v11 = vmul.f32 -1.442695, %v123_v8 }
  0xef   :  { %2545 = vpow2.f32 %v2215_v11  ;;  %v344_v11 = vrot.slane %v2747_v3, 1 }
  0xf7   :  { %v2544_v10 = vpop.eup %2543 }
  0xf8   :  { %134 = vrot.lane.b32.xlu0 %v2544_v10, %s2700_s0  ;;  %v343_v10 = vrot.slane %v2742_v2, 2 }
  0xf9   :  { %v2546_v12 = vpop.eup %2545 }
  0xfa   :  { %v129_v13 = vadd.f32 1.0, %v2546_v12  ;;  %v345_v12 = vsel %vm47_vm2, %v344_v11, %v343_v10 }
  0xfb   :  { %2324 = vmatmul.mubr.msk.f32.vlgmr.msra.gmra.mrb[2].mxu1 %vm49_vm3, %v345_v12 }
  0xfc   :  { %2547 = vrcp.f32 %v129_v13  ;;  %2439 = vmatpush1.bf16.msra.mxu1 %v2766_v25  ;;  %487 = vmatprep.mubr.f32.mxu1 %v2698_v0 }
  0xfd   :  { %2441 = vmatprep.subr.bf16.mxu1 %v2768_v26 }
 0x100   :  { %2443 = vmatpush1.bf16.msra.mxu1 %v2775_v30 }
 0x101   :  { %2337 = vmatprep.subr.mxu1 %v2698_v0 }
 0x106   :  { %v2548_v14 = vpop.eup %2547 }
 0x16a   :  { %v135_v15 = vpop.permute.xlu0 %134 }
 0x16b   :  { %v137_v16 = vmul.f32 %v2548_v14, %v135_v15 }
 0x16d   :  { %2549 = vtanh.f32 %v137_v16 }
 0x177   :  { %v2550_v31 = vpop.eup %2549 }
 0x178   :  { %140 = vrot.lane.b32.xlu0 %v2550_v31, %s2701_s26 }
 0x17c   :  { %304 = vrot.lane.b32.xlu0 %v137_v16, %s2702_s27 }
 0x1ce   :  { %v414_v19 = vpop.f32.mrb[2].mxu1 }
 0x1cf   :  { %v2325_v20 = vpop.f32.mrb[3].mxu1  ;;  %v415_v27 = vadd.f32 %v414_v19, %v2759_v6 }
 0x1ea   :  { %v141_v32 = vpop.permute.xlu0 %140 }
 0x1eb   :  { %v143_v33 = vmul.f32 %v2548_v14, %v141_v32 }
 0x1ed   :  { %219 = vrot.lane.b32.xlu1 %v143_v33, %s2702_s27 }
 0x1ee   :  { %v305_v51 = vpop.permute.xlu0 %304 }
 0x25f   :  { %v220_v36 = vpop.permute.xlu1 %219 }
 0x260   :  { %2218 = vmatmul.mubr.msk.f32.vlgmr.msra.gmra.mrb[2].mxu0 %vm221_vm4, %v220_v36 }
 0x261   :  { %2334 = vmatprep.mubr.msk.f32.mxu0 %vm2699_vm0, %v2698_v0  ;;  %2446 = vmatpush3.bf16.msra.mxu0 %v2801_v62 }
 0x262   :  { %2447 = vmatprep.subr.bf16.mxu0 %v2703_v61 }
 0x265   :  { %2449 = vmatpush3.bf16.msra.mxu0 %v2804_v4 }
 0x266   :  { %2451 = vmatprep.subr.bf16.mxu0 %v2764_v21 }
 0x333   :  { %v290_v39 = vpop.f32.mrb[2].mxu0 }
 0x334   :  { %v295_v40 = vadd.f32 %v290_v39, %v215_v37  ;;  %v292_v41 = vpop.f32.mrb[3].mxu0 }
 0x335   :  { %v324_v42 = vadd.f32 %v292_v41, %v2791_v38 }
 0x336   :  { %2551 = vtanh.f32 %v295_v40  ;;  %v2219_v45 = vmul.f32 -1.442695, %v295_v40 }
 0x337   :  { %2553 = vtanh.f32 %v324_v42  ;;  %v2220_v46 = vmul.f32 -1.442695, %v324_v42 }
 0x338   :  { %2555 = vpow2.f32 %v2219_v45 }
 0x339   :  { %2557 = vpow2.f32 %v2220_v46 }
 0x340   :  { %v2552_v43 = vpop.eup %2551 }
 0x341   :  { %v2554_v44 = vpop.eup %2553  ;;  %309 = vrot.lane.b32.xlu1 %v2552_v43, %s2700_s0 }
 0x342   :  { %333 = vrot.lane.b32.xlu0 %v2554_v44, %s2700_s0  ;;  %v2556_v47 = vpop.eup %2555 }
 0x343   :  { %v2558_v48 = vpop.eup %2557  ;;  %v299_v49 = vadd.f32 1.0, %v2556_v47 }
 0x344   :  { %v328_v50 = vadd.f32 1.0, %v2558_v48 }
 0x345   :  { %2559 = vrcp.f32 %v299_v49 }
 0x346   :  { %2561 = vrcp.f32 %v328_v50 }
 0x34f   :  { %v2560_v52 = vpop.eup %2559 }
 0x350   :  { %v2562_v54 = vpop.eup %2561  ;;  %v307_v7 = vmul.f32 %v2560_v52, %v305_v51 }
 0x3b3   :  { %v310_v53 = vpop.permute.xlu1 %309 }
 0x3b4   :  { %v312_v55 = vmul.f32 %v2560_v52, %v310_v53  ;;  %v334_v56 = vpop.permute.xlu0 %333 }
 0x3b5   :  { %v2796_v57 = vmul.f32 %v2562_v54, %v334_v56  ;;  %v625_v56 = vrot.slane %v2742_v2, 3 }
 0x3b6   :  { %314 = vrot.lane.b32.xlu1 %v312_v55, %s2702_s27 }
 0x3b7   :  { %2563 = vtanh.f32 %v2796_v57 }
 0x3c1   :  { %v2564_v5 = vpop.eup %2563 }
 0x3c2   :  { %339 = vrot.lane.b32.xlu0 %v2564_v5, %s2701_s26 }
 0x428   :  { %v315_v8 = vpop.permute.xlu1 %314 }
 0x429   :  { %v2810_v9 = vadd.f32 %v315_v8, %v307_v7 }
 0x42b   :  { %2565 = vtanh.f32 %v2810_v9 }
 0x434   :  { %v340_v13 = vpop.permute.xlu0 %339 }
 0x435   :  { %v2566_v14 = vpop.eup %2565  ;;  %v2822_v15 = vmul.f32 %v2562_v54, %v340_v13 }
 0x436   :  { %320 = vrot.lane.b32.xlu1 %v2566_v14, %s2700_s0 }
 0x437   :  { %521 = vrot.lane.b32.xlu0 %v2822_v15, %s2702_s27 }
 0x4a8   :  { %v321_v16 = vpop.permute.xlu1 %320 }
 0x4a9   :  { %v323_v17 = vmul.f32 %v2560_v52, %v321_v16  ;;  %v522_v18 = vpop.permute.xlu0 %521 }
 0x4aa   :  { %2335 = vmatmul.mubr.msk.f32.vlgmr.msra.gmra.mrb[4].mxu0 %vm221_vm4, %v522_v18 }
 0x4ab   :  { %419 = vrot.lane.b32.xlu1 %v323_v17, %s2702_s27  ;;  %2453 = vmatpush1.bf16.msra.mxu0 %v2766_v25 }
 0x4ac   :  { %2455 = vmatprep.subr.bf16.mxu0 %v2768_v26  ;;  %769 = vmatprep.mubr.f32.mxu0 %v2698_v0 }
 0x4af   :  { %2457 = vmatpush1.bf16.msra.mxu0 %v2775_v30 }
 0x4b0   :  { %2353 = vmatprep.subr.mxu0 %v2698_v0 }
 0x51d   :  { %v420_v22 = vpop.permute.xlu1 %419 }
 0x51e   :  { %2223 = vmatmul.mubr.msk.f32.vlgmr.msra.gmra.mrb[4].mxu1 %vm221_vm4, %v420_v22 }
 0x51f   :  { %2338 = vmatpush3.msk.msra.mxu1 %vm52_vm1, %v2737_v1  ;;  %2339 = vmatprep.mubr.msk.f32.mxu1 %vm2699_vm0, %v2698_v0 }
 0x520   :  { %2458 = vmatprep.subr.bf16.mxu1 %v2703_v61 }
 0x57d   :  { %v591_v23 = vpop.f32.mrb[4].mxu0 }
 0x57e   :  { %v2336_v24 = vpop.f32.mrb[5].mxu0 }
 0x5f1   :  { %v489_v28 = vpop.f32.mrb[4].mxu1 }
 0x5f2   :  { %v494_v29 = vadd.f32 %v489_v28, %v415_v27  ;;  %v491_v31 = vpop.f32.mrb[5].mxu1 }
 0x5f3   :  { %v519_v32 = vadd.f32 %v491_v31, %v2791_v38 }
 0x5f4   :  { %2567 = vtanh.f32 %v494_v29  ;;  %v2224_v36 = vmul.f32 -1.442695, %v494_v29 }
 0x5f5   :  { %v595_v33 = vadd.f32 %v591_v23, %v519_v32 }
 0x5f7   :  { %2569 = vtanh.f32 %v595_v33  ;;  %v2226_v37 = vmul.f32 -1.442695, %v595_v33 }
 0x5f8   :  { %2571 = vpow2.f32 %v2224_v36 }
 0x5f9   :  { %2573 = vpow2.f32 %v2226_v37 }
 0x5fe   :  { %v2568_v34 = vpop.eup %2567 }
 0x5ff   :  { %504 = vrot.lane.b32.xlu1 %v2568_v34, %s2700_s0 }
 0x601   :  { %v2570_v35 = vpop.eup %2569 }
 0x602   :  { %609 = vrot.lane.b32.xlu0 %v2570_v35, %s2700_s0  ;;  %v2572_v39 = vpop.eup %2571 }
 0x603   :  { %v2574_v40 = vpop.eup %2573  ;;  %v498_v41 = vadd.f32 1.0, %v2572_v39 }
 0x604   :  { %v599_v42 = vadd.f32 1.0, %v2574_v40 }
 0x605   :  { %2575 = vrcp.f32 %v498_v41 }
 0x606   :  { %604 = vrot.lane.b32.xlu0 %v2796_v57, %s2702_s27  ;;  %2577 = vrcp.f32 %v599_v42  ;;  %v626_v57 = vrot.slane %v2747_v3, 2 }
 0x608   :  { %v627_v58 = vsel %vm47_vm2, %v626_v57, %v625_v56 }
 0x609   :  { %2340 = vmatmul.mubr.msk.f32.vlgmr.msra.gmra.mrb[6].mxu1 %vm49_vm3, %v627_v58 }
 0x60a   :  { %2460 = vmatpush3.bf16.msra.mxu1 %v2801_v62  ;;  %2350 = vmatprep.mubr.msk.f32.mxu1 %vm2699_vm0, %v2698_v0 }
 0x60b   :  { %2461 = vmatprep.subr.bf16.mxu1 %v2703_v61 }
 0x60e   :  { %2463 = vmatpush3.bf16.msra.mxu1 %v2804_v4 }
 0x60f   :  { %v2576_v43 = vpop.eup %2575  ;;  %2465 = vmatprep.subr.bf16.mxu1 %v2764_v21 }
 0x610   :  { %v2578_v46 = vpop.eup %2577  ;;  %v502_v49 = vmul.f32 %v2576_v43, %v2810_v9 }
 0x671   :  { %v505_v44 = vpop.permute.xlu1 %504 }
 0x672   :  { %v507_v45 = vmul.f32 %v2576_v43, %v505_v44 }
 0x674   :  { %509 = vrot.lane.b32.xlu1 %v507_v45, %s2702_s27  ;;  %v610_v47 = vpop.permute.xlu0 %609 }
 0x675   :  { %v612_v48 = vmul.f32 %v2578_v46, %v610_v47  ;;  %v903_v47 = vrot.slane %v2742_v2, 4 }
 0x678   :  { %614 = vrot.lane.b32.xlu1 %v612_v48, %s2702_s27  ;;  %v605_v50 = vpop.permute.xlu0 %604  ;;  %v904_v48 = vrot.slane %v2747_v3, 3 }
 0x679   :  { %v607_v53 = vmul.f32 %v2578_v46, %v605_v50 }
 0x6dc   :  { %v696_v9 = vpop.f32.mrb[6].mxu1 }
 0x6dd   :  { %v2341_v10 = vpop.f32.mrb[7].mxu1  ;;  %v697_v13 = vadd.f32 %v696_v9, %v2759_v6 }
 0x6e6   :  { %v510_v51 = vpop.permute.xlu1 %509 }
 0x6e7   :  { %v2849_v52 = vadd.f32 %v510_v51, %v502_v49  ;;  %v905_v49 = vsel %vm47_vm2, %v904_v48, %v903_v47 }
 0x6e9   :  { %2579 = vtanh.f32 %v2849_v52 }
 0x6ea   :  { %v615_v54 = vpop.permute.xlu1 %614 }
 0x6eb   :  { %v2852_v55 = vadd.f32 %v615_v54, %v607_v53 }
 0x6ed   :  { %2581 = vtanh.f32 %v2852_v55 }
 0x6f3   :  { %v2580_v59 = vpop.eup %2579 }
 0x6f4   :  { %515 = vrot.lane.b32.xlu0 %v2580_v59, %s2700_s0 }
 0x6f7   :  { %v2582_v60 = vpop.eup %2581 }
 0x6f8   :  { %620 = vrot.lane.b32.xlu1 %v2582_v60, %s2700_s0 }
 0x766   :  { %v516_v63 = vpop.permute.xlu0 %515 }
 0x767   :  { %v518_v5 = vmul.f32 %v2576_v43, %v516_v63 }
 0x769   :  { %701 = vrot.lane.b32.xlu0 %v518_v5, %s2702_s27 }
 0x76a   :  { %v621_v7 = vpop.permute.xlu1 %620 }
 0x76b   :  { %v2868_v8 = vmul.f32 %v2578_v46, %v621_v7 }
 0x76d   :  { %803 = vrot.lane.b32.xlu1 %v2868_v8, %s2702_s27 }
 0x7db   :  { %v702_v11 = vpop.permute.xlu0 %701 }
 0x7dc   :  { %2229 = vmatmul.mubr.msk.f32.vlgmr.msra.gmra.mrb[6].mxu0 %vm221_vm4, %v702_v11 }
 0x7dd   :  { %2354 = vmatpush3.msk.msra.mxu0 %vm52_vm1, %v2737_v1  ;;  %2355 = vmatprep.mubr.msk.f32.mxu0 %vm2699_vm0, %v2698_v0 }
 0x7de   :  { %2472 = vmatprep.subr.bf16.mxu0 %v2703_v61 }
 0x7df   :  { %v804_v12 = vpop.permute.xlu1 %803 }
 0x7e0   :  { %2351 = vmatmul.mubr.msk.f32.vlgmr.msra.gmra.mrb[8].mxu1 %vm221_vm4, %v804_v12  ;;  %2356 = vmatmul.mubr.msk.f32.vlgmr.msra.gmra.mrb[8].mxu0 %vm49_vm3, %v905_v49 }
 0x7e1   :  { %2467 = vmatpush1.bf16.msra.mxu1 %v2766_v25  ;;  %1047 = vmatprep.mubr.f32.mxu1 %v2698_v0 }
 0x7e2   :  { %2469 = vmatprep.subr.bf16.mxu1 %v2768_v26  ;;  %2474 = vmatpush3.bf16.msra.mxu0 %v2801_v62 }
 0x7e3   :  { %2366 = vmatprep.mubr.msk.f32.mxu0 %vm2699_vm0, %v2698_v0  ;;  %2475 = vmatprep.subr.bf16.mxu0 %v2703_v61 }
 0x7e5   :  { %2471 = vmatpush1.bf16.msra.mxu1 %v2775_v30 }
 0x7e6   :  { %2369 = vmatprep.subr.mxu1 %v2698_v0  ;;  %2477 = vmatpush3.bf16.msra.mxu0 %v2804_v4 }
 0x7e7   :  { %2479 = vmatprep.subr.bf16.mxu0 %v2764_v21 }
 0x8af   :  { %v771_v14 = vpop.f32.mrb[6].mxu0 }
 0x8b0   :  { %v776_v16 = vadd.f32 %v771_v14, %v697_v13  ;;  %v773_v17 = vpop.f32.mrb[7].mxu0 }
 0x8b1   :  { %v801_v18 = vadd.f32 %v773_v17, %v2791_v38 }
 0x8b2   :  { %2583 = vtanh.f32 %v776_v16  ;;  %v2230_v27 = vmul.f32 -1.442695, %v776_v16 }
 0x8b3   :  { %v873_v19 = vpop.f32.mrb[8].mxu1  ;;  %v974_v58 = vpop.f32.mrb[8].mxu0 }
 0x8b4   :  { %v877_v20 = vadd.f32 %v873_v19, %v801_v18  ;;  %v2352_v22 = vpop.f32.mrb[9].mxu1  ;;  %v2357_v59 = vpop.f32.mrb[9].mxu0 }
 0x8b6   :  { %2585 = vtanh.f32 %v877_v20  ;;  %v2232_v28 = vmul.f32 -1.442695, %v877_v20 }
 0x8b7   :  { %2587 = vpow2.f32 %v2230_v27 }
 0x8b8   :  { %2589 = vpow2.f32 %v2232_v28 }
 0x8bc   :  { %v2584_v23 = vpop.eup %2583 }
 0x8bd   :  { %786 = vrot.lane.b32.xlu0 %v2584_v23, %s2700_s0 }
 0x8c0   :  { %v2586_v24 = vpop.eup %2585 }
 0x8c1   :  { %887 = vrot.lane.b32.xlu1 %v2586_v24, %s2700_s0  ;;  %v2588_v29 = vpop.eup %2587 }
 0x8c2   :  { %v780_v31 = vadd.f32 1.0, %v2588_v29  ;;  %v2590_v32 = vpop.eup %2589 }
 0x8c3   :  { %v881_v33 = vadd.f32 1.0, %v2590_v32 }
 0x8c4   :  { %2591 = vrcp.f32 %v780_v31 }
 0x8c5   :  { %2593 = vrcp.f32 %v881_v33 }
 0x8ce   :  { %v2592_v34 = vpop.eup %2591 }
 0x8cf   :  { %v2594_v37 = vpop.eup %2593  ;;  %v784_v41 = vmul.f32 %v2592_v34, %v2849_v52 }
 0x8d0   :  { %v885_v44 = vmul.f32 %v2594_v37, %v2852_v55  ;;  %v624_v55 = vadd.f32 %v2868_v8, %v2822_v15  ;;  %v975_v15 = vadd.f32 %v974_v58, %v2759_v6 }
 0x92f   :  { %v787_v35 = vpop.permute.xlu0 %786 }
 0x930   :  { %v789_v36 = vmul.f32 %v2592_v34, %v787_v35 }
 0x932   :  { %791 = vrot.lane.b32.xlu0 %v789_v36, %s2702_s27 }
 0x933   :  { %v888_v39 = vpop.permute.xlu1 %887 }
 0x934   :  { %v890_v40 = vmul.f32 %v2594_v37, %v888_v39  ;;  %v1181_v39 = vrot.slane %v2742_v2, 5 }
 0x936   :  { %892 = vrot.lane.b32.xlu1 %v890_v40, %s2702_s27  ;;  %v1182_v40 = vrot.slane %v2747_v3, 4 }
 0x9a4   :  { %v792_v42 = vpop.permute.xlu0 %791 }
 0x9a5   :  { %v2891_v43 = vadd.f32 %v792_v42, %v784_v41  ;;  %v1183_v41 = vsel %vm47_vm2, %v1182_v40, %v1181_v39 }
 0x9a7   :  { %2595 = vtanh.f32 %v2891_v43 }
 0x9a8   :  { %v893_v45 = vpop.permute.xlu1 %892 }
 0x9a9   :  { %v2895_v46 = vadd.f32 %v893_v45, %v885_v44 }
 0x9ab   :  { %2597 = vtanh.f32 %v2895_v46 }
 0x9b1   :  { %v2596_v50 = vpop.eup %2595 }
 0x9b2   :  { %797 = vrot.lane.b32.xlu0 %v2596_v50, %s2700_s0 }
 0x9b5   :  { %v2598_v51 = vpop.eup %2597 }
 0x9b6   :  { %898 = vrot.lane.b32.xlu1 %v2598_v51, %s2700_s0 }
 0xa24   :  { %v798_v52 = vpop.permute.xlu0 %797 }
 0xa25   :  { %v800_v53 = vmul.f32 %v2592_v34, %v798_v52 }
 0xa27   :  { %979 = vrot.lane.b32.xlu0 %v800_v53, %s2702_s27 }
 0xa28   :  { %v899_v54 = vpop.permute.xlu1 %898 }
 0xa29   :  { %v901_v56 = vmul.f32 %v2594_v37, %v899_v54 }
 0xa2b   :  { %v2913_v57 = vadd.f32 %v901_v56, %v624_v55  ;;  %1081 = vrot.lane.b32.xlu1 %v901_v56, %s2702_s27 }
 0xa99   :  { %v980_v60 = vpop.permute.xlu0 %979 }
 0xa9a   :  { %2235 = vmatmul.mubr.msk.f32.vlgmr.msra.gmra.mrb[10].mxu1 %vm221_vm4, %v980_v60 }
 0xa9b   :  { %2370 = vmatpush3.msk.msra.mxu1 %vm52_vm1, %v2737_v1  ;;  %2371 = vmatprep.mubr.msk.f32.mxu1 %vm2699_vm0, %v2698_v0 }
 0xa9c   :  { %2486 = vmatprep.subr.bf16.mxu1 %v2703_v61 }
 0xa9d   :  { %v1082_v63 = vpop.permute.xlu1 %1081 }
 0xa9e   :  { %2367 = vmatmul.mubr.msk.f32.vlgmr.msra.gmra.mrb[10].mxu0 %vm221_vm4, %v1082_v63  ;;  %2372 = vmatmul.mubr.msk.f32.vlgmr.msra.gmra.mrb[12].mxu1 %vm49_vm3, %v1183_v41 }
 0xa9f   :  { %2481 = vmatpush1.bf16.msra.mxu0 %v2766_v25  ;;  %1325 = vmatprep.mubr.f32.mxu0 %v2698_v0 }
 0xaa0   :  { %2483 = vmatprep.subr.bf16.mxu0 %v2768_v26  ;;  %2488 = vmatpush3.bf16.msra.mxu1 %v2801_v62 }
 0xaa1   :  { %2382 = vmatprep.mubr.msk.f32.mxu1 %vm2699_vm0, %v2698_v0  ;;  %2489 = vmatprep.subr.bf16.mxu1 %v2703_v61 }
 0xaa3   :  { %2485 = vmatpush1.bf16.msra.mxu0 %v2775_v30 }
 0xaa4   :  { %2385 = vmatprep.subr.mxu0 %v2698_v0  ;;  %2491 = vmatpush3.bf16.msra.mxu1 %v2804_v4 }
 0xaa5   :  { %2493 = vmatprep.subr.bf16.mxu1 %v2764_v21 }
 0xb6d   :  { %v1049_v5 = vpop.f32.mrb[10].mxu1 }
 0xb6e   :  { %v1054_v7 = vadd.f32 %v1049_v5, %v975_v15  ;;  %v1051_v8 = vpop.f32.mrb[11].mxu1 }
 0xb6f   :  { %v1079_v9 = vadd.f32 %v1051_v8, %v2791_v38 }
 0xb70   :  { %2599 = vtanh.f32 %v1054_v7  ;;  %v2236_v16 = vmul.f32 -1.442695, %v1054_v7 }
 0xb71   :  { %v1151_v10 = vpop.f32.mrb[10].mxu0  ;;  %v1252_v49 = vpop.f32.mrb[12].mxu1 }
 0xb72   :  { %v1155_v11 = vadd.f32 %v1151_v10, %v1079_v9  ;;  %v2368_v12 = vpop.f32.mrb[11].mxu0  ;;  %v2373_v50 = vpop.f32.mrb[13].mxu1  ;;  %v1253_v53 = vadd.f32 %v1252_v49, %v2759_v6 }
 0xb74   :  { %2601 = vtanh.f32 %v1155_v11  ;;  %v2238_v17 = vmul.f32 -1.442695, %v1155_v11 }
 0xb75   :  { %2603 = vpow2.f32 %v2236_v16 }
 0xb76   :  { %2605 = vpow2.f32 %v2238_v17 }
 0xb7a   :  { %v2600_v13 = vpop.eup %2599 }
 0xb7b   :  { %1064 = vrot.lane.b32.xlu0 %v2600_v13, %s2700_s0 }
 0xb7e   :  { %v2602_v14 = vpop.eup %2601 }
 0xb7f   :  { %1165 = vrot.lane.b32.xlu1 %v2602_v14, %s2700_s0  ;;  %v2604_v18 = vpop.eup %2603 }
 0xb80   :  { %v1058_v19 = vadd.f32 1.0, %v2604_v18  ;;  %v2606_v20 = vpop.eup %2605 }
 0xb81   :  { %v1159_v22 = vadd.f32 1.0, %v2606_v20 }
 0xb82   :  { %2607 = vrcp.f32 %v1058_v19 }
 0xb83   :  { %2609 = vrcp.f32 %v1159_v22 }
 0xb8c   :  { %v2608_v23 = vpop.eup %2607 }
 0xb8d   :  { %v2610_v28 = vpop.eup %2609  ;;  %v1062_v32 = vmul.f32 %v2608_v23, %v2891_v43 }
 0xb8e   :  { %v1163_v35 = vmul.f32 %v2610_v28, %v2895_v46 }
 0xbed   :  { %v1065_v24 = vpop.permute.xlu0 %1064 }
 0xbee   :  { %v1067_v27 = vmul.f32 %v2608_v23, %v1065_v24 }
 0xbf0   :  { %1069 = vrot.lane.b32.xlu0 %v1067_v27, %s2702_s27 }
 0xbf1   :  { %v1166_v29 = vpop.permute.xlu1 %1165 }
 0xbf2   :  { %v1168_v31 = vmul.f32 %v2610_v28, %v1166_v29  ;;  %v1460_v29 = vrot.slane %v2747_v3, 5 }
 0xbf4   :  { %1170 = vrot.lane.b32.xlu1 %v1168_v31, %s2702_s27 }
 0xc62   :  { %v1070_v33 = vpop.permute.xlu0 %1069 }
 0xc63   :  { %v2935_v34 = vadd.f32 %v1070_v33, %v1062_v32 }
 0xc65   :  { %2611 = vtanh.f32 %v2935_v34 }
 0xc66   :  { %v1171_v36 = vpop.permute.xlu1 %1170 }
 0xc67   :  { %v2939_v37 = vadd.f32 %v1171_v36, %v1163_v35 }
 0xc69   :  { %2613 = vtanh.f32 %v2939_v37 }
 0xc6f   :  { %v2612_v42 = vpop.eup %2611 }
 0xc70   :  { %1075 = vrot.lane.b32.xlu0 %v2612_v42, %s2700_s0 }
 0xc73   :  { %v2614_v43 = vpop.eup %2613 }
 0xc74   :  { %1176 = vrot.lane.b32.xlu1 %v2614_v43, %s2700_s0 }
 0xce2   :  { %v1076_v44 = vpop.permute.xlu0 %1075 }
 0xce3   :  { %v1078_v45 = vmul.f32 %v2608_v23, %v1076_v44 }
 0xce5   :  { %1257 = vrot.lane.b32.xlu0 %v1078_v45, %s2702_s27 }
 0xce6   :  { %v1177_v46 = vpop.permute.xlu1 %1176 }
 0xce7   :  { %v1179_v47 = vmul.f32 %v2610_v28, %v1177_v46  ;;  %v1459_v28 = vrot.slane %v2742_v2, 6 }
 0xce9   :  { %v2956_v48 = vadd.f32 %v1179_v47, %v2913_v57  ;;  %1359 = vrot.lane.b32.xlu1 %v1179_v47, %s2702_s27  ;;  %v1461_v31 = vsel %vm47_vm2, %v1460_v29, %v1459_v28 }
 0xd57   :  { %v1258_v51 = vpop.permute.xlu0 %1257 }
 0xd58   :  { %2241 = vmatmul.mubr.msk.f32.vlgmr.msra.gmra.mrb[12].mxu0 %vm221_vm4, %v1258_v51 }
 0xd59   :  { %2386 = vmatpush3.msk.msra.mxu0 %vm52_vm1, %v2737_v1  ;;  %2387 = vmatprep.mubr.msk.f32.mxu0 %vm2699_vm0, %v2698_v0 }
 0xd5a   :  { %2500 = vmatprep.subr.bf16.mxu0 %v2703_v61 }
 0xd5b   :  { %v1360_v52 = vpop.permute.xlu1 %1359 }
 0xd5c   :  { %2383 = vmatmul.mubr.msk.f32.vlgmr.msra.gmra.mrb[14].mxu1 %vm221_vm4, %v1360_v52  ;;  %2388 = vmatmul.mubr.msk.f32.vlgmr.msra.gmra.mrb[14].mxu0 %vm49_vm3, %v1461_v31 }
 0xd5d   :  { %2495 = vmatpush1.bf16.msra.mxu1 %v2766_v25  ;;  %1603 = vmatprep.mubr.f32.mxu1 %v2698_v0 }
 0xd5e   :  { %2497 = vmatprep.subr.bf16.mxu1 %v2768_v26  ;;  %2502 = vmatpush3.bf16.msra.mxu0 %v2801_v62 }
 0xd5f   :  { %2398 = vmatprep.mubr.msk.f32.mxu0 %vm2699_vm0, %v2698_v0  ;;  %2503 = vmatprep.subr.bf16.mxu0 %v2703_v61 }
 0xd61   :  { %2499 = vmatpush1.bf16.msra.mxu1 %v2775_v30 }
 0xd62   :  { %2401 = vmatprep.subr.mxu1 %v2698_v0  ;;  %2505 = vmatpush3.bf16.msra.mxu0 %v2804_v4 }
 0xd63   :  { %2507 = vmatprep.subr.bf16.mxu0 %v2764_v21 }
 0xe2b   :  { %v1327_v54 = vpop.f32.mrb[12].mxu0 }
 0xe2c   :  { %v1332_v55 = vadd.f32 %v1327_v54, %v1253_v53  ;;  %v1329_v56 = vpop.f32.mrb[13].mxu0 }
 0xe2d   :  { %v1357_v57 = vadd.f32 %v1329_v56, %v2791_v38 }
 0xe2e   :  { %2615 = vtanh.f32 %v1332_v55  ;;  %v2242_v5 = vmul.f32 -1.442695, %v1332_v55 }
 0xe2f   :  { %v1429_v58 = vpop.f32.mrb[14].mxu1  ;;  %v1530_v40 = vpop.f32.mrb[14].mxu0 }
 0xe30   :  { %v1433_v59 = vadd.f32 %v1429_v58, %v1357_v57  ;;  %v2384_v60 = vpop.f32.mrb[15].mxu1  ;;  %v2389_v41 = vpop.f32.mrb[15].mxu0 }
 0xe32   :  { %2617 = vtanh.f32 %v1433_v59  ;;  %v2244_v7 = vmul.f32 -1.442695, %v1433_v59 }
 0xe33   :  { %2619 = vpow2.f32 %v2242_v5 }
 0xe34   :  { %2621 = vpow2.f32 %v2244_v7 }
 0xe38   :  { %v2616_v63 = vpop.eup %2615 }
 0xe39   :  { %1342 = vrot.lane.b32.xlu0 %v2616_v63, %s2700_s0 }
 0xe3c   :  { %v2618_v15 = vpop.eup %2617 }
 0xe3d   :  { %1443 = vrot.lane.b32.xlu1 %v2618_v15, %s2700_s0  ;;  %v2620_v8 = vpop.eup %2619 }
 0xe3e   :  { %v1336_v9 = vadd.f32 1.0, %v2620_v8  ;;  %v2622_v10 = vpop.eup %2621 }
 0xe3f   :  { %v1437_v11 = vadd.f32 1.0, %v2622_v10 }
 0xe40   :  { %2623 = vrcp.f32 %v1336_v9 }
 0xe41   :  { %2625 = vrcp.f32 %v1437_v11 }
 0xe4a   :  { %v2624_v12 = vpop.eup %2623 }
 0xe4b   :  { %v2626_v16 = vpop.eup %2625  ;;  %v1340_v19 = vmul.f32 %v2624_v12, %v2935_v34 }
 0xe4c   :  { %v1441_v23 = vmul.f32 %v2626_v16, %v2939_v37 }
 0xeab   :  { %v1343_v13 = vpop.permute.xlu0 %1342 }
 0xeac   :  { %v1345_v14 = vmul.f32 %v2624_v12, %v1343_v13  ;;  %v1737_v13 = vrot.slane %v2742_v2, 7 }
 0xeae   :  { %1347 = vrot.lane.b32.xlu0 %v1345_v14, %s2702_s27  ;;  %v1738_v14 = vrot.slane %v2747_v3, 6 }
 0xeaf   :  { %v1444_v17 = vpop.permute.xlu1 %1443 }
 0xeb0   :  { %v1446_v18 = vmul.f32 %v2626_v16, %v1444_v17 }
 0xeb2   :  { %1448 = vrot.lane.b32.xlu1 %v1446_v18, %s2702_s27 }
 0xf20   :  { %v1348_v20 = vpop.permute.xlu0 %1347 }
 0xf21   :  { %v2978_v22 = vadd.f32 %v1348_v20, %v1340_v19 }
 0xf23   :  { %2627 = vtanh.f32 %v2978_v22 }
 0xf24   :  { %v1449_v24 = vpop.permute.xlu1 %1448 }
 0xf25   :  { %v2982_v27 = vadd.f32 %v1449_v24, %v1441_v23 }
 0xf27   :  { %2629 = vtanh.f32 %v2982_v27 }
 0xf2d   :  { %v2628_v32 = vpop.eup %2627 }
 0xf2e   :  { %1353 = vrot.lane.b32.xlu0 %v2628_v32, %s2700_s0 }
 0xf31   :  { %v2630_v33 = vpop.eup %2629 }
 0xf32   :  { %1454 = vrot.lane.b32.xlu1 %v2630_v33, %s2700_s0 }
 0xfa0   :  { %v1354_v34 = vpop.permute.xlu0 %1353 }
 0xfa1   :  { %v1356_v35 = vmul.f32 %v2624_v12, %v1354_v34 }
 0xfa3   :  { %1535 = vrot.lane.b32.xlu0 %v1356_v35, %s2702_s27 }
 0xfa4   :  { %v1455_v36 = vpop.permute.xlu1 %1454 }
 0xfa5   :  { %v1457_v37 = vmul.f32 %v2626_v16, %v1455_v36  ;;  %v1739_v16 = vsel %vm47_vm2, %v1738_v14, %v1737_v13  ;;  %v40_v14 = vld [vmem:[#allocation2 + $0xa0] ss:$0 sm:$0xff] }
 0xfa7   :  { %v2999_v39 = vadd.f32 %v1457_v37, %v2956_v48  ;;  %1637 = vrot.lane.b32.xlu1 %v1457_v37, %s2702_s27 }
0x1015   :  { %v1536_v42 = vpop.permute.xlu0 %1535 }
0x1016   :  { %2247 = vmatmul.mubr.msk.f32.vlgmr.msra.gmra.mrb[16].mxu1 %vm221_vm4, %v1536_v42 }
0x1017   :  { %2402 = vmatpush3.msk.msra.mxu1 %vm52_vm1, %v2737_v1  ;;  %2403 = vmatprep.mubr.msk.f32.mxu1 %vm2699_vm0, %v2698_v0  ;;  %v1531_v1 = vadd.f32 %v1530_v40, %v2759_v6 }
0x1018   :  { %2514 = vmatprep.subr.bf16.mxu1 %v2703_v61 }
0x1019   :  { %v1638_v43 = vpop.permute.xlu1 %1637 }
0x101a   :  { %2399 = vmatmul.mubr.msk.f32.vlgmr.msra.gmra.mrb[16].mxu0 %vm221_vm4, %v1638_v43  ;;  %2404 = vmatmul.mubr.msk.f32.vlgmr.msra.gmra.mrb[18].mxu1 %vm49_vm3, %v1739_v16 }
0x101b   :  { %2509 = vmatpush1.bf16.msra.mxu0 %v2766_v25  ;;  %1881 = vmatprep.mubr.f32.mxu0 %v2698_v0 }
0x101c   :  { %2511 = vmatprep.subr.bf16.mxu0 %v2768_v26  ;;  %2516 = vmatpush3.bf16.msra.mxu1 %v2801_v62 }
0x101d   :  { %2414 = vmatprep.mubr.msk.f32.mxu1 %vm2699_vm0, %v2698_v0  ;;  %2517 = vmatprep.subr.bf16.mxu1 %v2703_v61 }
0x101f   :  { %2513 = vmatpush1.bf16.msra.mxu0 %v2775_v30 }
0x1020   :  { %2521 = vmatprep.subr.bf16.mxu0 %v2764_v21  ;;  %2519 = vmatpush3.bf16.msra.mxu1 %v2804_v4 }
0x1021   :  { %2528 = vmatprep.subr.bf16.mxu1 %v2703_v61 }
0x10e9   :  { %v1605_v44 = vpop.f32.mrb[16].mxu1 }
0x10ea   :  { %v1610_v45 = vadd.f32 %v1605_v44, %v1531_v1  ;;  %v1607_v46 = vpop.f32.mrb[17].mxu1 }
0x10eb   :  { %v1635_v47 = vadd.f32 %v1607_v46, %v2791_v38 }
0x10ec   :  { %2631 = vtanh.f32 %v1610_v45  ;;  %v2248_v53 = vmul.f32 -1.442695, %v1610_v45 }
0x10ed   :  { %v1707_v48 = vpop.f32.mrb[16].mxu0  ;;  %v1808_v23 = vpop.f32.mrb[18].mxu1 }
0x10ee   :  { %v1711_v49 = vadd.f32 %v1707_v48, %v1635_v47  ;;  %v2400_v50 = vpop.f32.mrb[17].mxu0  ;;  %v2405_v24 = vpop.f32.mrb[19].mxu1 }
0x10f0   :  { %2633 = vtanh.f32 %v1711_v49  ;;  %v2250_v21 = vmul.f32 -1.442695, %v1711_v49 }
0x10f1   :  { %2635 = vpow2.f32 %v2248_v53 }
0x10f2   :  { %2637 = vpow2.f32 %v2250_v21 }
0x10f6   :  { %v2632_v51 = vpop.eup %2631 }
0x10f7   :  { %1620 = vrot.lane.b32.xlu0 %v2632_v51, %s2700_s0 }
0x10fa   :  { %v2634_v52 = vpop.eup %2633 }
0x10fb   :  { %1721 = vrot.lane.b32.xlu1 %v2634_v52, %s2700_s0  ;;  %v2636_v54 = vpop.eup %2635 }
0x10fc   :  { %v1614_v55 = vadd.f32 1.0, %v2636_v54  ;;  %v2638_v56 = vpop.eup %2637 }
0x10fd   :  { %v1715_v57 = vadd.f32 1.0, %v2638_v56 }
0x10fe   :  { %2639 = vrcp.f32 %v1614_v55 }
0x10ff   :  { %2641 = vrcp.f32 %v1715_v57 }
0x1108   :  { %v2640_v58 = vpop.eup %2639 }
0x1109   :  { %v2642_v63 = vpop.eup %2641  ;;  %v1618_v7 = vmul.f32 %v2640_v58, %v2978_v22 }
0x110a   :  { %v1719_v10 = vmul.f32 %v2642_v63, %v2982_v27 }
0x1169   :  { %v1621_v59 = vpop.permute.xlu0 %1620 }
0x116a   :  { %v1623_v60 = vmul.f32 %v2640_v58, %v1621_v59 }
0x116c   :  { %1625 = vrot.lane.b32.xlu0 %v1623_v60, %s2702_s27 }
0x116d   :  { %v1722_v15 = vpop.permute.xlu1 %1721 }
0x116e   :  { %v1724_v5 = vmul.f32 %v2642_v63, %v1722_v15 }
0x1170   :  { %1726 = vrot.lane.b32.xlu1 %v1724_v5, %s2702_s27 }
0x11de   :  { %v1626_v8 = vpop.permute.xlu0 %1625 }
0x11df   :  { %v3021_v9 = vadd.f32 %v1626_v8, %v1618_v7 }
0x11e1   :  { %2643 = vtanh.f32 %v3021_v9 }
0x11e2   :  { %v1727_v11 = vpop.permute.xlu1 %1726 }
0x11e3   :  { %v3025_v12 = vadd.f32 %v1727_v11, %v1719_v10 }
0x11e5   :  { %2645 = vtanh.f32 %v3025_v12 }
0x11eb   :  { %v2644_v17 = vpop.eup %2643 }
0x11ec   :  { %1631 = vrot.lane.b32.xlu0 %v2644_v17, %s2700_s0 }
0x11ef   :  { %v2646_v2 = vpop.eup %2645 }
0x11f0   :  { %1732 = vrot.lane.b32.xlu1 %v2646_v2, %s2700_s0 }
0x125e   :  { %v1632_v3 = vpop.permute.xlu0 %1631 }
0x125f   :  { %v1634_v18 = vmul.f32 %v2640_v58, %v1632_v3 }
0x1261   :  { %1813 = vrot.lane.b32.xlu0 %v1634_v18, %s2702_s27 }
0x1262   :  { %v1733_v19 = vpop.permute.xlu1 %1732 }
0x1263   :  { %v1735_v20 = vmul.f32 %v2642_v63, %v1733_v19 }
0x1265   :  { %v3042_v22 = vadd.f32 %v1735_v20, %v2999_v39  ;;  %1915 = vrot.lane.b32.xlu1 %v1735_v20, %s2702_s27 }
0x12d3   :  { %v1814_v27 = vpop.permute.xlu0 %1813 }
0x12d4   :  { %2253 = vmatmul.mubr.msk.f32.vlgmr.msra.gmra.mrb[18].mxu0 %vm221_vm4, %v1814_v27  ;;  %v41_v27 = vld [vmem:[#allocation2 + $0xa1] ss:$0 sm:$0xff] }
0x12d5   :  { %2523 = vmatpush1.bf16.msra.mxu0 %v2766_v25  ;;  %2084 = vmatprep.mubr.f32.mxu0 %v2698_v0  ;;  %v1809_v25 = vadd.f32 %v1808_v23, %v2759_v6 }
0x12d6   :  { %2525 = vmatprep.subr.bf16.mxu0 %v2768_v26 }
0x12d7   :  { %v1916_v28 = vpop.permute.xlu1 %1915 }
0x12d8   :  { %2415 = vmatmul.mubr.msk.f32.vlgmr.msra.gmra.mrb[20].mxu1 %vm221_vm4, %v1916_v28 }
0x12d9   :  { %2527 = vmatpush1.bf16.msra.mxu0 %v2775_v30  ;;  %2530 = vmatpush3.bf16.msra.mxu1 %v2801_v62 }
0x12da   :  { %2531 = vmatprep.subr.bf16.mxu1 %v2703_v61  ;;  %2425 = vmatprep.mubr.msk.f32.mxu1 %vm2699_vm0, %v2698_v0 }
0x12dd   :  { %2533 = vmatpush3.bf16.msra.mxu1 %v2804_v4 }
0x13a7   :  { %v1883_v29 = vpop.f32.mrb[18].mxu0 }
0x13a8   :  { %v1888_v31 = vadd.f32 %v1883_v29, %v1809_v25  ;;  %v1885_v32 = vpop.f32.mrb[19].mxu0 }
0x13a9   :  { %v1913_v26 = vadd.f32 %v1885_v32, %v2791_v38 }
0x13aa   :  { %2647 = vtanh.f32 %v1888_v31  ;;  %v2254_v0 = vmul.f32 -1.442695, %v1888_v31 }
0x13ab   :  { %v1985_v33 = vpop.f32.mrb[20].mxu1 }
0x13ac   :  { %v1989_v34 = vadd.f32 %v1985_v33, %v1913_v26  ;;  %v2416_v30 = vpop.f32.mrb[21].mxu1 }
0x13ae   :  { %2649 = vtanh.f32 %v1989_v34  ;;  %v2256_v4 = vmul.f32 -1.442695, %v1989_v34 }
0x13af   :  { %2651 = vpow2.f32 %v2254_v0 }
0x13b0   :  { %2653 = vpow2.f32 %v2256_v4 }
0x13b4   :  { %v2648_v62 = vpop.eup %2647 }
0x13b5   :  { %1898 = vrot.lane.b32.xlu0 %v2648_v62, %s2700_s0 }
0x13b8   :  { %v2650_v61 = vpop.eup %2649 }
0x13b9   :  { %1999 = vrot.lane.b32.xlu1 %v2650_v61, %s2700_s0  ;;  %v2652_v6 = vpop.eup %2651 }
0x13ba   :  { %v1892_v35 = vadd.f32 1.0, %v2652_v6  ;;  %v2654_v36 = vpop.eup %2653 }
0x13bb   :  { %v1993_v37 = vadd.f32 1.0, %v2654_v36 }
0x13bc   :  { %2655 = vrcp.f32 %v1892_v35 }
0x13bd   :  { %2657 = vrcp.f32 %v1993_v37 }
0x13c6   :  { %v2656_v39 = vpop.eup %2655 }
0x13c7   :  { %v2658_v42 = vpop.eup %2657  ;;  %v1896_v44 = vmul.f32 %v2656_v39, %v3021_v9 }
0x13c8   :  { %v1997_v47 = vmul.f32 %v2658_v42, %v3025_v12 }
0x1427   :  { %v1899_v40 = vpop.permute.xlu0 %1898 }
0x1428   :  { %v1901_v41 = vmul.f32 %v2656_v39, %v1899_v40 }
0x142a   :  { %1903 = vrot.lane.b32.xlu0 %v1901_v41, %s2702_s27 }
0x142b   :  { %v2000_v43 = vpop.permute.xlu1 %1999 }
0x142c   :  { %v2002_v1 = vmul.f32 %v2658_v42, %v2000_v43 }
0x142e   :  { %2004 = vrot.lane.b32.xlu1 %v2002_v1, %s2702_s27 }
0x149c   :  { %v1904_v45 = vpop.permute.xlu0 %1903 }
0x149d   :  { %v1906_v46 = vadd.f32 %v1904_v45, %v1896_v44 }
0x149f   :  { %2659 = vtanh.f32 %v1906_v46 }
0x14a0   :  { %v2005_v48 = vpop.permute.xlu1 %2004 }
0x14a1   :  { %v2007_v49 = vadd.f32 %v2005_v48, %v1997_v47 }
0x14a3   :  { %2661 = vtanh.f32 %v2007_v49 }
0x14a9   :  { %v2660_v50 = vpop.eup %2659 }
0x14aa   :  { %1909 = vrot.lane.b32.xlu0 %v2660_v50, %s2700_s0 }
0x14ad   :  { %v2662_v51 = vpop.eup %2661 }
0x14ae   :  { %2010 = vrot.lane.b32.xlu1 %v2662_v51, %s2700_s0 }
0x151c   :  { %v1910_v52 = vpop.permute.xlu0 %1909 }
0x151d   :  { %v1912_v53 = vmul.f32 %v2656_v39, %v1910_v52 }
0x151f   :  { %2016 = vrot.lane.b32.xlu0 %v1912_v53, %s2702_s27 }
0x1520   :  { %v2011_v21 = vpop.permute.xlu1 %2010 }
0x1521   :  { %v2013_v54 = vmul.f32 %v2658_v42, %v2011_v21 }
0x1523   :  { %v2014_v55 = vadd.f32 %v2013_v54, %v3042_v22  ;;  %2092 = vrot.lane.b32.xlu1 %v2013_v54, %s2702_s27 }
0x1591   :  { %v2017_v56 = vpop.permute.xlu0 %2016 }
0x1592   :  { %2257 = vmatmul.mubr.msk.f32.vlgmr.msra.gmra.mrb[20].mxu0 %vm221_vm4, %v2017_v56 }
0x1595   :  { %v2093_v57 = vpop.permute.xlu1 %2092 }
0x1596   :  { %2426 = vmatmul.mubr.msk.f32.vlgmr.msra.gmra.mrb[22].mxu1 %vm221_vm4, %v2093_v57 }
0x1665   :  { %v2086_v58 = vpop.f32.mrb[20].mxu0 }
0x1666   :  { %v2087_v59 = vpop.f32.mrb[21].mxu0 }
0x1667   :  { %v2090_v60 = vadd.f32 %v2087_v59, %v2791_v38 }
0x1669   :  { %v2162_v63 = vpop.f32.mrb[22].mxu1 }
0x166a   :  { %v2166_v15 = vadd.f32 %v2162_v63, %v2090_v60  ;;  %v2427_v5 = vpop.f32.mrb[23].mxu1 }
0x166c   :  { %2663 = vtanh.f32 %v2166_v15  ;;  %v2259_v8 = vmul.f32 -1.442695, %v2166_v15 }
0x166e   :  { %2665 = vpow2.f32 %v2259_v8 }
0x1676   :  { %v2664_v7 = vpop.eup %2663 }
0x1677   :  { %2176 = vrot.lane.b32.xlu0 %v2664_v7, %s2700_s0 }
0x1678   :  { %v2666_v9 = vpop.eup %2665 }
0x1679   :  { %v2170_v10 = vadd.f32 1.0, %v2666_v9 }
0x167b   :  { %2667 = vrcp.f32 %v2170_v10 }
0x1685   :  { %v2668_v11 = vpop.eup %2667 }
0x1686   :  { %v2174_v38 = vmul.f32 %v2668_v11, %v2007_v49 }
0x16e9   :  { %v2177_v12 = vpop.permute.xlu0 %2176 }
0x16ea   :  { %v2179_v13 = vmul.f32 %v2668_v11, %v2177_v12 }
0x16ec   :  { %2181 = vrot.lane.b32.xlu1 %v2179_v13, %s2702_s27 }
0x16f0   :  { %2193 = vrot.lane.b32.xlu1 %v40_v14, %s2701_s26 }
0x175e   :  { %v2182_v16 = vpop.permute.xlu1 %2181 }
0x175f   :  { %v2184_v17 = vadd.f32 %v2182_v16, %v2174_v38 }
0x1761   :  { %2669 = vtanh.f32 %v2184_v17 }
0x1762   :  { %v2194_v19 = vpop.permute.xlu1 %2193 }
0x176b   :  { %v2670_v2 = vpop.eup %2669 }
0x176c   :  { %2187 = vrot.lane.b32.xlu0 %v2670_v2, %s2700_s0 }
0x17de   :  { %v2188_v3 = vpop.permute.xlu0 %2187 }
0x17df   :  { %v2190_v18 = vmul.f32 %v2668_v11, %v2188_v3 }
0x17e1   :  { %v2191_v20 = vadd.f32 %v2190_v18, %v2014_v55 }
0x17e3   :  { %v2196_v22 = vmul.f32 %v2194_v19, %v2191_v20 }
0x17e5   :  { %2198 = vrot.lane.b32.xlu0 %v2196_v22, %s2702_s27 }
0x1857   :  { %v2199_v23 = vpop.permute.xlu0 %2198 }
0x1858   :  { %v2202_v24 = vsel %vm2201_vm5, %v2199_v23, 0.0 }
0x1859   :  { %2203 = vadd.xlane.f32.xlu1 %v2202_v24 }
0x18e6   :  { %v2204_v28 = vpop.xlane.xlu1 %2203 }
0x18e7   :  { %v2205_v25 = vadd.f32 %v2204_v28, %v41_v27 }
0x18e9   :  { %2207 = vst.msk [vmem:[%s3082_s2] sm:$0x3] %vm2206_vm6, %v2205_v25 }
0x18ea   :  { %2212 = vsyncpa [#allocation3], 1 }

</bundles_post_ra>
